<compile_context>
chip_gen: v6e
topology: v6e:2x2x1
jax: 0.10.0
libtpu: 0.0.40
codegen_flags: <defaults>
</compile_context>

<pallas_src>
import functools
import math

import jax
import jax.numpy as jnp
from jax.experimental import pallas as pl
from jax.experimental.pallas import tpu as pltpu

BLOCKS = [1, 2, 3, 2, 2]
STRIDES = [1, 4, 4, 4, 4]
BN_EPS = 1e-5

_LANE = 128
_FEAT_DTYPE = jnp.bfloat16      # inter-layer feature storage / MXU input dtype


# ------------------------------ small helpers ------------------------------ #

def _round_up(x, m):
    return ((x + m - 1) // m) * m


def _tpu_vmem_bytes():
    try:
        info = pltpu.get_tpu_info()
        cap = getattr(info, "vmem_capacity_bytes", None)
        if cap:
            return int(cap)
    except Exception:
        pass
    return 64 * 1024 * 1024     # conservative default (v7x per-core VMEM)


_VMEM_CAP = _tpu_vmem_bytes()
# Budget for the P-dependent (double-buffered) tiles of one kernel.
_TILE_BUDGET = max(8 << 20, min(_VMEM_CAP // 4, 24 << 20))
# Scoped VMEM limit handed to Mosaic: tiles + double-buffered weights + scratch.
_VMEM_LIMIT = int(min(_VMEM_CAP * 3 // 4, 96 << 20))


def _compiler_params():
    return pltpu.CompilerParams(dimension_semantics=("parallel",),
                                vmem_limit_bytes=_VMEM_LIMIT)


def _choose_tile(p128, col_bytes, fixed_bytes, cap=None):
    """Largest lane-dense tile of the point axis that fits the VMEM budget,
    while guaranteeing >= 2 grid steps whenever p128 >= 256 (megacore / v7x
    dual-TC sharding + DMA/compute overlap)."""
    limit = p128 // 2 if p128 >= 2 * _LANE else p128
    if cap is not None:
        limit = min(limit, cap)
    limit = max(limit, _LANE)
    for t in (2048, 1024, 512, 256, 128):
        if t <= limit and 2 * col_bytes * t + fixed_bytes <= _TILE_BUDGET:
            return t
    return _LANE


def _pad_cols(a, p_pad):
    p = a.shape[-1]
    if p == p_pad:
        return a
    return jnp.pad(a, [(0, 0)] * (a.ndim - 1) + [(0, p_pad - p)])


def _unpad_cols(a, p):
    return a if a.shape[-1] == p else a[..., :p]


def _folded(p, cin_pad=None):
    """Fold inference-BN scale into the conv weight; weight in bf16 for the MXU,
    bias column kept in f32 for the epilogue.  Optionally zero-pad Cin."""
    w = p["w"] * p["scale"][:, None]
    if cin_pad is not None and cin_pad > w.shape[1]:
        w = jnp.pad(w, ((0, 0), (0, cin_pad - w.shape[1])))
    return w.astype(_FEAT_DTYPE), p["bias"].reshape(-1, 1).astype(jnp.float32)


# ----------------------------- Pallas kernels ------------------------------ #

def _pconv_kernel(x_ref, w_ref, b_ref, o_ref, *, relu):
    # x: (Cin, T) bf16   w: (Cout, Cin) bf16   b: (Cout, 1) f32   o: (Cout, T)
    y = jnp.dot(w_ref[...], x_ref[...], preferred_element_type=jnp.float32)
    y = y + b_ref[...]
    if relu:
        y = jnp.maximum(y, 0.0)
    o_ref[...] = y.astype(o_ref.dtype)


def _pconv2_kernel(xa_ref, xb_ref, wa_ref, wb_ref, b_ref, o_ref, *, relu):
    # Two-input 1x1 conv: W_skip @ xa + W_interp @ xb + b (avoids the HBM concat).
    y = jnp.dot(wa_ref[...], xa_ref[...], preferred_element_type=jnp.float32)
    y = y + jnp.dot(wb_ref[...], xb_ref[...], preferred_element_type=jnp.float32)
    y = y + b_ref[...]
    if relu:
        y = jnp.maximum(y, 0.0)
    o_ref[...] = y.astype(o_ref.dtype)


def _neighbor_max(g_ref, w, k):
    """K small matmuls against one weight tile with a fused running max.
    Two independent partial maxima (even/odd neighbors) give the scheduler ILP
    on v5e's single vector-store slot."""
    m0 = jnp.dot(w, g_ref[0], preferred_element_type=jnp.float32)
    m1 = jnp.dot(w, g_ref[1], preferred_element_type=jnp.float32) if k > 1 else None
    for kk in range(2, k):
        y = jnp.dot(w, g_ref[kk], preferred_element_type=jnp.float32)
        if kk % 2 == 0:
            m0 = jnp.maximum(m0, y)
        else:
            m1 = jnp.maximum(m1, y)
    return m0 if m1 is None else jnp.maximum(m0, m1)


def _gconv_max_kernel(g_ref, w_ref, b_ref, o_ref, *, k):
    # Shared MLP over grouped dp_fj features fused with the neighbor max.
    # max_k relu(y_k + b) == relu(max_k y_k + b) (bias shared, relu monotone).
    m = _neighbor_max(g_ref, w_ref[...], k)
    o_ref[...] = jnp.maximum(m + b_ref[...], 0.0).astype(o_ref.dtype)


def _invres_kernel(g_ref, res_ref, wla_ref, bla_ref, w1_ref, b1_ref,
                   w2_ref, b2_ref, o_ref, *, k):
    """Fully fused InvResMLP block for one point tile:
       local-agg conv+max -> pw expand (C->4C) -> pw project (4C->C) + res + relu.
    The (C, T) and (4C, T) intermediates never leave VMEM/vregs."""
    m = _neighbor_max(g_ref, wla_ref[...], k)
    y = jnp.maximum(m + bla_ref[...], 0.0)                              # (C, T)   f32
    h = jnp.dot(w1_ref[...], y.astype(w1_ref.dtype),
                preferred_element_type=jnp.float32)
    h = jnp.maximum(h + b1_ref[...], 0.0)                               # (4C, T)  f32
    z = jnp.dot(w2_ref[...], h.astype(w2_ref.dtype),
                preferred_element_type=jnp.float32)
    z = z + b2_ref[...] + res_ref[...].astype(jnp.float32)
    o_ref[...] = jnp.maximum(z, 0.0).astype(o_ref.dtype)


# ----------------------------- Pallas wrappers ------------------------------ #

def pointwise_conv_bn(x, p, relu=True, out_dtype=_FEAT_DTYPE):
    """1x1 Conv1d(bias=False) + BN(inference) [+ ReLU].  x: (Cin, P) -> (Cout, P)."""
    w, b = _folded(p)
    x = x.astype(_FEAT_DTYPE)
    cin, P = x.shape
    cout = w.shape[0]
    p128 = _round_up(P, _LANE)
    if p128 < 2 * _LANE:
        # Coarse levels / FC heads with P <= 128: launch+DMA latency dominates — plain XLA.
        y = jnp.dot(w, x, preferred_element_type=jnp.float32) + b
        if relu:
            y = jnp.maximum(y, 0.0)
        return y.astype(out_dtype)

    col_bytes = 2 * cin + 2 * cout + 4 * cout          # bf16 in/out tiles + f32 epilogue
    fixed = 2 * (2 * cout * cin + 4 * cout)            # double-buffered weight + bias
    tile = _choose_tile(p128, col_bytes, fixed)
    p_pad = _round_up(P, tile)

    out = pl.pallas_call(
        functools.partial(_pconv_kernel, relu=relu),
        out_shape=jax.ShapeDtypeStruct((cout, p_pad), out_dtype),
        grid=(p_pad // tile,),
        in_specs=[
            pl.BlockSpec((cin, tile), lambda i: (0, i)),
            pl.BlockSpec((cout, cin), lambda i: (0, 0)),
            pl.BlockSpec((cout, 1), lambda i: (0, 0)),
        ],
        out_specs=pl.BlockSpec((cout, tile), lambda i: (0, i)),
        compiler_params=_compiler_params(),
    )(_pad_cols(x, p_pad), w, b)
    return _unpad_cols(out, P)


def fp_conv_bn(x_skip, x_interp, p, relu=True, out_dtype=_FEAT_DTYPE):
    """Decoder FP conv without concat: relu(W_skip @ x_skip + W_interp @ x_interp + b)."""
    w, b = _folded(p)
    xa = x_skip.astype(_FEAT_DTYPE)
    xb = x_interp.astype(_FEAT_DTYPE)
    c_skip, P = xa.shape
    cb = xb.shape[0]
    cout = w.shape[0]
    wa, wb = w[:, :c_skip], w[:, c_skip:]
    p128 = _round_up(P, _LANE)
    if p128 < 2 * _LANE:
        y = (jnp.dot(wa, xa, preferred_element_type=jnp.float32)
             + jnp.dot(wb, xb, preferred_element_type=jnp.float32) + b)
        if relu:
            y = jnp.maximum(y, 0.0)
        return y.astype(out_dtype)

    col_bytes = 2 * (c_skip + cb) + 2 * cout + 4 * cout
    fixed = 2 * (2 * cout * (c_skip + cb) + 4 * cout)
    tile = _choose_tile(p128, col_bytes, fixed)
    p_pad = _round_up(P, tile)

    out = pl.pallas_call(
        functools.partial(_pconv2_kernel, relu=relu),
        out_shape=jax.ShapeDtypeStruct((cout, p_pad), out_dtype),
        grid=(p_pad // tile,),
        in_specs=[
            pl.BlockSpec((c_skip, tile), lambda i: (0, i)),
            pl.BlockSpec((cb, tile), lambda i: (0, i)),
            pl.BlockSpec((cout, c_skip), lambda i: (0, 0)),
            pl.BlockSpec((cout, cb), lambda i: (0, 0)),
            pl.BlockSpec((cout, 1), lambda i: (0, 0)),
        ],
        out_specs=pl.BlockSpec((cout, tile), lambda i: (0, i)),
        compiler_params=_compiler_params(),
    )(_pad_cols(xa, p_pad), _pad_cols(xb, p_pad), wa, wb, b)
    return _unpad_cols(out, P)


def grouped_conv_bn_relu_max(grouped, p):
    """Shared MLP (conv+BN+ReLU) over grouped dp_fj features fused with the
    neighbor max.  grouped: (K, Cin_pad, P) bf16 -> (Cout, P) bf16."""
    K, cin, P = grouped.shape
    w, b = _folded(p, cin_pad=cin)
    cout = w.shape[0]
    p128 = _round_up(P, _LANE)
    if p128 < 2 * _LANE:
        y = jnp.einsum("oc,kcp->kop", w.astype(jnp.float32), grouped.astype(jnp.float32))
        return jnp.maximum(jnp.max(y, axis=0) + b, 0.0).astype(_FEAT_DTYPE)

    col_bytes = 2 * K * cin + 2 * cout + 2 * 4 * cout   # grouped + out + two f32 partial maxima
    fixed = 2 * (2 * cout * cin + 4 * cout)
    cap = 512 if cout >= 128 else None                   # keep f32 accumulators small on v5e
    tile = _choose_tile(p128, col_bytes, fixed, cap=cap)
    p_pad = _round_up(P, tile)

    out = pl.pallas_call(
        functools.partial(_gconv_max_kernel, k=K),
        out_shape=jax.ShapeDtypeStruct((cout, p_pad), _FEAT_DTYPE),
        grid=(p_pad // tile,),
        in_specs=[
            pl.BlockSpec((K, cin, tile), lambda i: (0, 0, i)),
            pl.BlockSpec((cout, cin), lambda i: (0, 0)),
            pl.BlockSpec((cout, 1), lambda i: (0, 0)),
        ],
        out_specs=pl.BlockSpec((cout, tile), lambda i: (0, i)),
        compiler_params=_compiler_params(),
    )(_pad_cols(grouped, p_pad), w, b)
    return _unpad_cols(out, P)


def invres_block(grouped, res, bp):
    """Fused InvResMLP block.  grouped: (K, Cin_pad, P) bf16, res: (C, P) -> (C, P) bf16."""
    K, cin, P = grouped.shape
    wla, bla = _folded(bp["la"], cin_pad=cin)
    w1, b1 = _folded(bp["pw1"])
    w2, b2 = _folded(bp["pw2"])
    cmid = w1.shape[0]
    C = w2.shape[0]
    res = res.astype(_FEAT_DTYPE)
    p128 = _round_up(P, _LANE)
    if p128 < 2 * _LANE:
        y = jnp.einsum("oc,kcp->kop", wla.astype(jnp.float32), grouped.astype(jnp.float32))
        y = jnp.maximum(jnp.max(y, axis=0) + bla, 0.0)
        h = jnp.maximum(jnp.dot(w1, y.astype(_FEAT_DTYPE),
                                preferred_element_type=jnp.float32) + b1, 0.0)
        z = jnp.dot(w2, h.astype(_FEAT_DTYPE),
                    preferred_element_type=jnp.float32) + b2 + res.astype(jnp.float32)
        return jnp.maximum(z, 0.0).astype(_FEAT_DTYPE)

    # bf16 grouped/res/out tiles + f32 intermediates (C and 4C) + two f32 partial maxima.
    col_bytes = 2 * (K * cin + 2 * C) + 4 * (C + cmid) + 2 * 4 * C
    fixed = 2 * (2 * (C * cin + cmid * C + C * cmid) + 4 * (2 * C + cmid))
    tile = _choose_tile(p128, col_bytes, fixed)
    p_pad = _round_up(P, tile)

    out = pl.pallas_call(
        functools.partial(_invres_kernel, k=K),
        out_shape=jax.ShapeDtypeStruct((C, p_pad), _FEAT_DTYPE),
        grid=(p_pad // tile,),
        in_specs=[
            pl.BlockSpec((K, cin, tile), lambda i: (0, 0, i)),
            pl.BlockSpec((C, tile), lambda i: (0, i)),
            pl.BlockSpec((C, cin), lambda i: (0, 0)),
            pl.BlockSpec((C, 1), lambda i: (0, 0)),
            pl.BlockSpec((cmid, C), lambda i: (0, 0)),
            pl.BlockSpec((cmid, 1), lambda i: (0, 0)),
            pl.BlockSpec((C, cmid), lambda i: (0, 0)),
            pl.BlockSpec((C, 1), lambda i: (0, 0)),
        ],
        out_specs=pl.BlockSpec((C, tile), lambda i: (0, i)),
        compiler_params=_compiler_params(),
    )(_pad_cols(grouped, p_pad), _pad_cols(res, p_pad), wla, bla, w1, b1, w2, b2)
    return _unpad_cols(out, P)


# --------------------------- JAX glue (indexing) ---------------------------- #

def knn_idx(query_p, support_p, k):
    # TODO(synk): ball query ('ballquery') approximated by kNN (same nsample, no radius cutoff).
    d2 = jnp.sum((query_p[:, :, None, :] - support_p[:, None, :, :]) ** 2, axis=-1)
    return jnp.argsort(d2, axis=-1)[:, :, :k]


def group_dp_fj(support_p, support_f, query_p, idx, radius):
    """Grouped dp_fj features in the neighbor-major layout the fused kernels
    expect: (K, Cin_pad, B*M) bf16 with Cin_pad = round_up(C+3, 16) so vregs /
    MXU feeds stay dense."""
    B, M, K = idx.shape
    C = support_f.shape[0]
    N = support_p.shape[1]
    f_cbn = support_f.reshape(C, B, N)

    gx = jax.vmap(lambda pb, ib: pb[ib])(support_p, idx)                  # (B, M, K, 3)
    dp = (gx - query_p[:, :, None, :]) / radius                           # normalize_dp
    dp = jnp.transpose(dp, (2, 3, 0, 1)).reshape(K, 3, B * M).astype(_FEAT_DTYPE)

    fj = jax.vmap(lambda fb, ib: fb[:, ib], in_axes=(1, 0))(f_cbn, idx)   # (B, C, M, K)
    fj = jnp.transpose(fj, (3, 1, 0, 2)).reshape(K, C, B * M).astype(_FEAT_DTYPE)

    cin_pad = _round_up(C + 3, 16)
    parts = [dp, fj]
    if cin_pad > C + 3:
        parts.append(jnp.zeros((K, cin_pad - (C + 3), B * M), _FEAT_DTYPE))
    return jnp.concatenate(parts, axis=1)                                 # (K, Cin_pad, B*M)


def three_nn_interpolate(p_fine, p_coarse, f_coarse):
    """Inverse-distance 3-NN interpolation.  f_coarse: (C, B*Mc) -> (C, B*Nf) bf16."""
    B, Nf, _ = p_fine.shape
    Mc = p_coarse.shape[1]
    C = f_coarse.shape[0]
    k = min(3, Mc)
    f_cbm = f_coarse.reshape(C, B, Mc)
    d2 = jnp.sum((p_fine[:, :, None, :] - p_coarse[:, None, :, :]) ** 2, axis=-1)
    idx = jnp.argsort(d2, axis=-1)[:, :, :k]                              # (B, Nf, k)
    d2k = jnp.take_along_axis(d2, idx, axis=-1)
    w = 1.0 / (d2k + 1e-8)
    w = w / jnp.sum(w, axis=-1, keepdims=True)
    fk = jax.vmap(lambda fb, ib: fb[:, ib], in_axes=(1, 0))(f_cbm, idx)   # (B, C, Nf, k)
    out = jnp.sum(fk.astype(jnp.float32) * w[:, None, :, :], axis=-1)     # (B, C, Nf)
    return jnp.transpose(out, (1, 0, 2)).reshape(C, B * Nf).astype(_FEAT_DTYPE)


# ------------------------------- Parameters --------------------------------- #

def conv_bn_params(key, cin, cout):
    w = jax.random.normal(key, (cout, cin), jnp.float32) * (1.0 / math.sqrt(cin))
    # inference-mode BatchNorm with default stats: gamma=1, beta=0, mean=0, var=1
    scale = jnp.full((cout,), 1.0 / math.sqrt(1.0 + BN_EPS), jnp.float32)
    bias = jnp.zeros((cout,), jnp.float32)
    return {"w": w, "scale": scale, "bias": bias}


def init_params(key, in_channels, width, out_dim, expansion=4):
    cs = [width * (2 ** i) for i in range(5)]     # [w, 2w, 4w, 8w, 16w]
    keys = iter(jax.random.split(key, 64))
    params = {"stem": conv_bn_params(next(keys), in_channels, cs[0])}
    stages = []
    for i in range(1, 5):
        cin, cout = cs[i - 1], cs[i]
        sa = conv_bn_params(next(keys), cin + 3, cout)        # dp_fj adds 3 channels
        blks = []
        for _ in range(BLOCKS[i] - 1):                        # InvResMLP blocks
            blks.append({
                "la": conv_bn_params(next(keys), cout + 3, cout),
                "pw1": conv_bn_params(next(keys), cout, cout * expansion),
                "pw2": conv_bn_params(next(keys), cout * expansion, cout),
            })
        stages.append({"sa": sa, "blocks": blks})
    params["stages"] = stages
    # TODO(synk): decoder FP MLP depth of PointNextDecoder_v2 unknown; single conv layer used.
    params["fp"] = [conv_bn_params(next(keys), cs[j] + cs[j + 1], cs[j]) for j in range(4)]
    params["fc"] = [
        conv_bn_params(next(keys), cs[4], out_dim),   # layer1_fc (16w -> out_dim)
        conv_bn_params(next(keys), cs[2], out_dim),   # layer2_fc (4w  -> out_dim)
        conv_bn_params(next(keys), cs[1], out_dim),   # layer3_fc (2w  -> out_dim)
        conv_bn_params(next(keys), cs[0], out_dim),   # layer4_fc (w   -> out_dim)
    ]
    return params


# --------------------------------- Forward ---------------------------------- #

def forward(params, x, *, radius, nsample):
    # x: (B, N, 3)
    B, N, _ = x.shape
    f_input = jnp.concatenate([x, x[:, :, 2:]], axis=-1)                  # (B, N, 4)
    f_input = jnp.transpose(f_input, (2, 0, 1)).reshape(-1, B * N)        # (4, B*N)

    # ---------------- encoder ----------------
    p_list = [x]
    f = pointwise_conv_bn(f_input, params["stem"], relu=True)             # (w, B*N) bf16
    f_list = [f]
    p = x
    r = radius
    for i in range(1, 5):
        sp = params["stages"][i - 1]
        stride = STRIDES[i]
        M = p.shape[1] // stride
        # TODO(synk): furthest-point sampling approximated by strided subsampling.
        new_p = p[:, ::stride, :][:, :M, :]
        k = min(nsample, p.shape[1])
        idx = knn_idx(new_p, p, k)
        grouped = group_dp_fj(p, f, new_p, idx, r)                        # (K, C+3pad, B*M)
        f = grouped_conv_bn_relu_max(grouped, sp["sa"])                   # strided SetAbstraction
        p = new_p
        for bp in sp["blocks"]:                                           # fused InvResMLP blocks
            k = min(nsample, p.shape[1])
            idx = knn_idx(p, p, k)
            grouped = group_dp_fj(p, f, p, idx, r * 2.0)
            f = invres_block(grouped, f, bp)
        p_list.append(p)
        f_list.append(f)
        r = r * 2.0

    # -------- decoder (feature propagation, coarse -> fine, concat-free) --------
    f_dec = list(f_list)
    for j in range(3, -1, -1):
        interp = three_nn_interpolate(p_list[j], p_list[j + 1], f_dec[j + 1])
        f_dec[j] = fp_conv_bn(f_list[j], interp, params["fp"][j], relu=True)

    def to_bcn(feat, n_pts):
        c = feat.shape[0]
        return jnp.transpose(feat.reshape(c, B, n_pts), (1, 0, 2))        # (B, C, n_pts)

    feats1, points1 = f_dec[4], p_list[4]    # 16w channels, coarsest points
    feats2, points2 = f_dec[2], p_list[2]    # 4w
    feats3, points3 = f_dec[1], p_list[1]    # 2w
    feats4, points4 = f_dec[0], p_list[0]    # w, finest points

    feats1_out = to_bcn(pointwise_conv_bn(feats1, params["fc"][0], relu=False,
                                          out_dtype=jnp.float32), points1.shape[1])
    feats2_out = to_bcn(pointwise_conv_bn(feats2, params["fc"][1], relu=False,
                                          out_dtype=jnp.float32), points2.shape[1])
    feats3_out = to_bcn(pointwise_conv_bn(feats3, params["fc"][2], relu=False,
                                          out_dtype=jnp.float32), points3.shape[1])
    feats4_out = to_bcn(pointwise_conv_bn(feats4, params["fc"][3], relu=False,
                                          out_dtype=jnp.float32), points4.shape[1])

    return (feats1_out, feats2_out, feats3_out, feats4_out,
            points1[:, :, :3], points2[:, :, :3],
            points3[:, :, :3], points4[:, :, :3])


# ----------------------------------- Main ------------------------------------ #

if __name__ == "__main__":
    B, N = 2, 512
    in_channels, width, out_dim = 4, 8, 16
    radius, nsample = 0.1, 8

    key = jax.random.PRNGKey(0)
    kx, kp = jax.random.split(key)
    x = jax.random.uniform(kx, (B, N, 3), jnp.float32)
    params = init_params(kp, in_channels, width, out_dim)

    fwd = jax.jit(lambda pa, xx: forward(pa, xx, radius=radius, nsample=nsample))
    outs = fwd(params, x)
    jax.block_until_ready(outs)

    # sanity on output shapes (feats are (B, out_dim, N_level), points are (B, N_level, 3))
    assert outs[0].shape == (B, out_dim, N // 256)
    assert outs[1].shape == (B, out_dim, N // 16)
    assert outs[2].shape == (B, out_dim, N // 4)
    assert outs[3].shape == (B, out_dim, N)
    assert outs[4].shape == (B, N // 256, 3)
    assert outs[7].shape == (B, N, 3)
    assert all(bool(jnp.isfinite(o.astype(jnp.float32)).all()) for o in outs)
    print("KERNEL_OK")
</pallas_src>

<mosaic_0001>
module attributes {stable_mosaic.version = 11 : i64} {
  func.func @_pconv_kernel(%arg0: i32, %arg1: memref<4x512xbf16, #tpu.memory_space<vmem>>, %arg2: memref<8x4xbf16, #tpu.memory_space<vmem>>, %arg3: memref<8x1xf32, #tpu.memory_space<vmem>>, %arg4: memref<8x512xbf16, #tpu.memory_space<vmem>>) attributes {dimension_semantics = [#tpu.dimension_semantics<parallel>], iteration_bounds = array<i64: 2>, scalar_prefetch = 0 : i64, scratch_operands = 0 : i64, tpu.core_type = #tpu.core_type<tc>, window_params = [{transform_indices = @transform_0, window_bounds = array<i64: 4, 512>}, {pipeline_mode = #tpu.pipeline_mode<synchronous>, transform_indices = @transform_1, window_bounds = array<i64: 8, 4>}, {pipeline_mode = #tpu.pipeline_mode<synchronous>, transform_indices = @transform_2, window_bounds = array<i64: 8, 1>}, {transform_indices = @transform_3, window_bounds = array<i64: 8, 512>}]} {
    %c0 = arith.constant 0 : index
    %c0_0 = arith.constant 0 : index
    %0 = vector.load %arg2[%c0, %c0_0] : memref<8x4xbf16, #tpu.memory_space<vmem>>, vector<8x4xbf16>
    %c0_1 = arith.constant 0 : index
    %c0_2 = arith.constant 0 : index
    %1 = vector.load %arg1[%c0_1, %c0_2] : memref<4x512xbf16, #tpu.memory_space<vmem>>, vector<4x512xbf16>
    %cst = arith.constant dense<0.000000e+00> : vector<8x512xf32>
    %2 = tpu.matmul %0, %1, %cst {dimension_numbers = #tpu.dot_dimension_numbers<[1], [0], [0], [1], [0, 0, 1, 1], [], []>} : vector<8x4xbf16>, vector<4x512xbf16>, vector<8x512xf32> -> vector<8x512xf32>
    %c0_3 = arith.constant 0 : index
    %c0_4 = arith.constant 0 : index
    %3 = vector.load %arg3[%c0_3, %c0_4] : memref<8x1xf32, #tpu.memory_space<vmem>>, vector<8x1xf32>
    %4 = vector.broadcast %3 : vector<8x1xf32> to vector<8x512xf32>
    %5 = arith.addf %2, %4 : vector<8x512xf32>
    %cst_5 = arith.constant 0.000000e+00 : f32
    %6 = vector.broadcast %cst_5 : f32 to vector<8x512xf32>
    %7 = arith.maximumf %5, %6 : vector<8x512xf32>
    %8 = arith.truncf %7 : vector<8x512xf32> to vector<8x512xbf16>
    %c0_6 = arith.constant 0 : index
    %c0_7 = arith.constant 0 : index
    %9 = vector.load %arg4[%c0_6, %c0_7] : memref<8x512xbf16, #tpu.memory_space<vmem>>, vector<8x512xbf16>
    tpu.vector_store %arg4[%c0_6, %c0_7], %8 {strides = array<i32>} : memref<8x512xbf16, #tpu.memory_space<vmem>>, vector<8x512xbf16>,
    return
  }
  func.func @transform_0(%arg0: i32) -> (i32, i32) {
    %c0_i32 = arith.constant 0 : i32
    %c0_i32_0 = arith.constant 0 : i32
    return %c0_i32, %arg0 : i32, i32
  }
  func.func @transform_1(%arg0: i32) -> (i32, i32) {
    %c0_i32 = arith.constant 0 : i32
    %c0_i32_0 = arith.constant 0 : i32
    %c0_i32_1 = arith.constant 0 : i32
    return %c0_i32, %c0_i32_0 : i32, i32
  }
  func.func @transform_2(%arg0: i32) -> (i32, i32) {
    %c0_i32 = arith.constant 0 : i32
    %c0_i32_0 = arith.constant 0 : i32
    %c0_i32_1 = arith.constant 0 : i32
    return %c0_i32, %c0_i32_0 : i32, i32
  }
  func.func @transform_3(%arg0: i32) -> (i32, i32) {
    %c0_i32 = arith.constant 0 : i32
    %c0_i32_0 = arith.constant 0 : i32
    return %c0_i32, %arg0 : i32, i32
  }
}

module attributes {stable_mosaic.version = 11 : i64} {
  func.func @_gconv_max_kernel(%arg0: i32, %arg1: memref<8x16x128xbf16, #tpu.memory_space<vmem>>, %arg2: memref<16x16xbf16, #tpu.memory_space<vmem>>, %arg3: memref<16x1xf32, #tpu.memory_space<vmem>>, %arg4: memref<16x128xbf16, #tpu.memory_space<vmem>>) attributes {dimension_semantics = [#tpu.dimension_semantics<parallel>], iteration_bounds = array<i64: 2>, scalar_prefetch = 0 : i64, scratch_operands = 0 : i64, tpu.core_type = #tpu.core_type<tc>, window_params = [{transform_indices = @transform_0, window_bounds = array<i64: 8, 16, 128>}, {pipeline_mode = #tpu.pipeline_mode<synchronous>, transform_indices = @transform_1, window_bounds = array<i64: 16, 16>}, {pipeline_mode = #tpu.pipeline_mode<synchronous>, transform_indices = @transform_2, window_bounds = array<i64: 16, 1>}, {transform_indices = @transform_3, window_bounds = array<i64: 16, 128>}]} {
    %c0 = arith.constant 0 : index
    %c0_0 = arith.constant 0 : index
    %0 = vector.load %arg2[%c0, %c0_0] : memref<16x16xbf16, #tpu.memory_space<vmem>>, vector<16x16xbf16>
    %c0_1 = arith.constant 0 : index
    %c0_2 = arith.constant 0 : index
    %c0_3 = arith.constant 0 : index
    %1 = vector.load %arg1[%c0_1, %c0_2, %c0_3] : memref<8x16x128xbf16, #tpu.memory_space<vmem>>, vector<1x16x128xbf16>
    %2 = vector.shape_cast %1 : vector<1x16x128xbf16> to vector<16x128xbf16>
    %cst = arith.constant dense<0.000000e+00> : vector<16x128xf32>
    %3 = tpu.matmul %0, %2, %cst {dimension_numbers = #tpu.dot_dimension_numbers<[1], [0], [0], [1], [0, 0, 1, 1], [], []>} : vector<16x16xbf16>, vector<16x128xbf16>, vector<16x128xf32> -> vector<16x128xf32>
    %c1 = arith.constant 1 : index
    %c0_4 = arith.constant 0 : index
    %c0_5 = arith.constant 0 : index
    %4 = vector.load %arg1[%c1, %c0_4, %c0_5] : memref<8x16x128xbf16, #tpu.memory_space<vmem>>, vector<1x16x128xbf16>
    %5 = vector.shape_cast %4 : vector<1x16x128xbf16> to vector<16x128xbf16>
    %cst_6 = arith.constant dense<0.000000e+00> : vector<16x128xf32>
    %6 = tpu.matmul %0, %5, %cst_6 {dimension_numbers = #tpu.dot_dimension_numbers<[1], [0], [0], [1], [0, 0, 1, 1], [], []>} : vector<16x16xbf16>, vector<16x128xbf16>, vector<16x128xf32> -> vector<16x128xf32>
    %c2 = arith.constant 2 : index
    %c0_7 = arith.constant 0 : index
    %c0_8 = arith.constant 0 : index
    %7 = vector.load %arg1[%c2, %c0_7, %c0_8] : memref<8x16x128xbf16, #tpu.memory_space<vmem>>, vector<1x16x128xbf16>
    %8 = vector.shape_cast %7 : vector<1x16x128xbf16> to vector<16x128xbf16>
    %cst_9 = arith.constant dense<0.000000e+00> : vector<16x128xf32>
    %9 = tpu.matmul %0, %8, %cst_9 {dimension_numbers = #tpu.dot_dimension_numbers<[1], [0], [0], [1], [0, 0, 1, 1], [], []>} : vector<16x16xbf16>, vector<16x128xbf16>, vector<16x128xf32> -> vector<16x128xf32>
    %10 = arith.maximumf %3, %9 : vector<16x128xf32>
    %c3 = arith.constant 3 : index
    %c0_10 = arith.constant 0 : index
    %c0_11 = arith.constant 0 : index
    %11 = vector.load %arg1[%c3, %c0_10, %c0_11] : memref<8x16x128xbf16, #tpu.memory_space<vmem>>, vector<1x16x128xbf16>
    %12 = vector.shape_cast %11 : vector<1x16x128xbf16> to vector<16x128xbf16>
    %cst_12 = arith.constant dense<0.000000e+00> : vector<16x128xf32>
    %13 = tpu.matmul %0, %12, %cst_12 {dimension_numbers = #tpu.dot_dimension_numbers<[1], [0], [0], [1], [0, 0, 1, 1], [], []>} : vector<16x16xbf16>, vector<16x128xbf16>, vector<16x128xf32> -> vector<16x128xf32>
    %14 = arith.maximumf %6, %13 : vector<16x128xf32>
    %c4 = arith.constant 4 : index
    %c0_13 = arith.constant 0 : index
    %c0_14 = arith.constant 0 : index
    %15 = vector.load %arg1[%c4, %c0_13, %c0_14] : memref<8x16x128xbf16, #tpu.memory_space<vmem>>, vector<1x16x128xbf16>
    %16 = vector.shape_cast %15 : vector<1x16x128xbf16> to vector<16x128xbf16>
    %cst_15 = arith.constant dense<0.000000e+00> : vector<16x128xf32>
    %17 = tpu.matmul %0, %16, %cst_15 {dimension_numbers = #tpu.dot_dimension_numbers<[1], [0], [0], [1], [0, 0, 1, 1], [], []>} : vector<16x16xbf16>, vector<16x128xbf16>, vector<16x128xf32> -> vector<16x128xf32>
    %18 = arith.maximumf %10, %17 : vector<16x128xf32>
    %c5 = arith.constant 5 : index
    %c0_16 = arith.constant 0 : index
    %c0_17 = arith.constant 0 : index
    %19 = vector.load %arg1[%c5, %c0_16, %c0_17] : memref<8x16x128xbf16, #tpu.memory_space<vmem>>, vector<1x16x128xbf16>
    %20 = vector.shape_cast %19 : vector<1x16x128xbf16> to vector<16x128xbf16>
    %cst_18 = arith.constant dense<0.000000e+00> : vector<16x128xf32>
    %21 = tpu.matmul %0, %20, %cst_18 {dimension_numbers = #tpu.dot_dimension_numbers<[1], [0], [0], [1], [0, 0, 1, 1], [], []>} : vector<16x16xbf16>, vector<16x128xbf16>, vector<16x128xf32> -> vector<16x128xf32>
    %22 = arith.maximumf %14, %21 : vector<16x128xf32>
    %c6 = arith.constant 6 : index
    %c0_19 = arith.constant 0 : index
    %c0_20 = arith.constant 0 : index
    %23 = vector.load %arg1[%c6, %c0_19, %c0_20] : memref<8x16x128xbf16, #tpu.memory_space<vmem>>, vector<1x16x128xbf16>
    %24 = vector.shape_cast %23 : vector<1x16x128xbf16> to vector<16x128xbf16>
    %cst_21 = arith.constant dense<0.000000e+00> : vector<16x128xf32>
    %25 = tpu.matmul %0, %24, %cst_21 {dimension_numbers = #tpu.dot_dimension_numbers<[1], [0], [0], [1], [0, 0, 1, 1], [], []>} : vector<16x16xbf16>, vector<16x128xbf16>, vector<16x128xf32> -> vector<16x128xf32>
    %26 = arith.maximumf %18, %25 : vector<16x128xf32>
    %c7 = arith.constant 7 : index
    %c0_22 = arith.constant 0 : index
    %c0_23 = arith.constant 0 : index
    %27 = vector.load %arg1[%c7, %c0_22, %c0_23] : memref<8x16x128xbf16, #tpu.memory_space<vmem>>, vector<1x16x128xbf16>
    %28 = vector.shape_cast %27 : vector<1x16x128xbf16> to vector<16x128xbf16>
    %cst_24 = arith.constant dense<0.000000e+00> : vector<16x128xf32>
    %29 = tpu.matmul %0, %28, %cst_24 {dimension_numbers = #tpu.dot_dimension_numbers<[1], [0], [0], [1], [0, 0, 1, 1], [], []>} : vector<16x16xbf16>, vector<16x128xbf16>, vector<16x128xf32> -> vector<16x128xf32>
    %30 = arith.maximumf %22, %29 : vector<16x128xf32>
    %31 = arith.maximumf %26, %30 : vector<16x128xf32>
    %c0_25 = arith.constant 0 : index
    %c0_26 = arith.constant 0 : index
    %32 = vector.load %arg3[%c0_25, %c0_26] : memref<16x1xf32, #tpu.memory_space<vmem>>, vector<16x1xf32>
    %33 = vector.broadcast %32 : vector<16x1xf32> to vector<16x128xf32>
    %34 = arith.addf %31, %33 : vector<16x128xf32>
    %cst_27 = arith.constant 0.000000e+00 : f32
    %35 = vector.broadcast %cst_27 : f32 to vector<16x128xf32>
    %36 = arith.maximumf %34, %35 : vector<16x128xf32>
    %37 = arith.truncf %36 : vector<16x128xf32> to vector<16x128xbf16>
    %c0_28 = arith.constant 0 : index
    %c0_29 = arith.constant 0 : index
    %38 = vector.load %arg4[%c0_28, %c0_29] : memref<16x128xbf16, #tpu.memory_space<vmem>>, vector<16x128xbf16>
    tpu.vector_store %arg4[%c0_28, %c0_29], %37 {strides = array<i32>} : memref<16x128xbf16, #tpu.memory_space<vmem>>, vector<16x128xbf16>,
    return
  }
  func.func @transform_0(%arg0: i32) -> (i32, i32, i32) {
    %c0_i32 = arith.constant 0 : i32
    %c0_i32_0 = arith.constant 0 : i32
    %c0_i32_1 = arith.constant 0 : i32
    return %c0_i32, %c0_i32_0, %arg0 : i32, i32, i32
  }
  func.func @transform_1(%arg0: i32) -> (i32, i32) {
    %c0_i32 = arith.constant 0 : i32
    %c0_i32_0 = arith.constant 0 : i32
    %c0_i32_1 = arith.constant 0 : i32
    return %c0_i32, %c0_i32_0 : i32, i32
  }
  func.func @transform_2(%arg0: i32) -> (i32, i32) {
    %c0_i32 = arith.constant 0 : i32
    %c0_i32_0 = arith.constant 0 : i32
    %c0_i32_1 = arith.constant 0 : i32
    return %c0_i32, %c0_i32_0 : i32, i32
  }
  func.func @transform_3(%arg0: i32) -> (i32, i32) {
    %c0_i32 = arith.constant 0 : i32
    %c0_i32_0 = arith.constant 0 : i32
    return %c0_i32, %arg0 : i32, i32
  }
}

module attributes {stable_mosaic.version = 11 : i64} {
  func.func @_invres_kernel(%arg0: i32, %arg1: memref<8x32x128xbf16, #tpu.memory_space<vmem>>, %arg2: memref<16x128xbf16, #tpu.memory_space<vmem>>, %arg3: memref<16x32xbf16, #tpu.memory_space<vmem>>, %arg4: memref<16x1xf32, #tpu.memory_space<vmem>>, %arg5: memref<64x16xbf16, #tpu.memory_space<vmem>>, %arg6: memref<64x1xf32, #tpu.memory_space<vmem>>, %arg7: memref<16x64xbf16, #tpu.memory_space<vmem>>, %arg8: memref<16x1xf32, #tpu.memory_space<vmem>>, %arg9: memref<16x128xbf16, #tpu.memory_space<vmem>>) attributes {dimension_semantics = [#tpu.dimension_semantics<parallel>], iteration_bounds = array<i64: 2>, scalar_prefetch = 0 : i64, scratch_operands = 0 : i64, tpu.core_type = #tpu.core_type<tc>, window_params = [{transform_indices = @transform_0, window_bounds = array<i64: 8, 32, 128>}, {transform_indices = @transform_1, window_bounds = array<i64: 16, 128>}, {pipeline_mode = #tpu.pipeline_mode<synchronous>, transform_indices = @transform_2, window_bounds = array<i64: 16, 32>}, {pipeline_mode = #tpu.pipeline_mode<synchronous>, transform_indices = @transform_3, window_bounds = array<i64: 16, 1>}, {pipeline_mode = #tpu.pipeline_mode<synchronous>, transform_indices = @transform_4, window_bounds = array<i64: 64, 16>}, {pipeline_mode = #tpu.pipeline_mode<synchronous>, transform_indices = @transform_5, window_bounds = array<i64: 64, 1>}, {pipeline_mode = #tpu.pipeline_mode<synchronous>, transform_indices = @transform_6, window_bounds = array<i64: 16, 64>}, {pipeline_mode = #tpu.pipeline_mode<synchronous>, transform_indices = @transform_7, window_bounds = array<i64: 16, 1>}, {transform_indices = @transform_8, window_bounds = array<i64: 16, 128>}]} {
    %c0 = arith.constant 0 : index
    %c0_0 = arith.constant 0 : index
    %0 = vector.load %arg3[%c0, %c0_0] : memref<16x32xbf16, #tpu.memory_space<vmem>>, vector<16x32xbf16>
    %c0_1 = arith.constant 0 : index
    %c0_2 = arith.constant 0 : index
    %c0_3 = arith.constant 0 : index
    %1 = vector.load %arg1[%c0_1, %c0_2, %c0_3] : memref<8x32x128xbf16, #tpu.memory_space<vmem>>, vector<1x32x128xbf16>
    %2 = vector.shape_cast %1 : vector<1x32x128xbf16> to vector<32x128xbf16>
    %cst = arith.constant dense<0.000000e+00> : vector<16x128xf32>
    %3 = tpu.matmul %0, %2, %cst {dimension_numbers = #tpu.dot_dimension_numbers<[1], [0], [0], [1], [0, 0, 1, 1], [], []>} : vector<16x32xbf16>, vector<32x128xbf16>, vector<16x128xf32> -> vector<16x128xf32>
    %c1 = arith.constant 1 : index
    %c0_4 = arith.constant 0 : index
    %c0_5 = arith.constant 0 : index
    %4 = vector.load %arg1[%c1, %c0_4, %c0_5] : memref<8x32x128xbf16, #tpu.memory_space<vmem>>, vector<1x32x128xbf16>
    %5 = vector.shape_cast %4 : vector<1x32x128xbf16> to vector<32x128xbf16>
    %cst_6 = arith.constant dense<0.000000e+00> : vector<16x128xf32>
    %6 = tpu.matmul %0, %5, %cst_6 {dimension_numbers = #tpu.dot_dimension_numbers<[1], [0], [0], [1], [0, 0, 1, 1], [], []>} : vector<16x32xbf16>, vector<32x128xbf16>, vector<16x128xf32> -> vector<16x128xf32>
    %c2 = arith.constant 2 : index
    %c0_7 = arith.constant 0 : index
    %c0_8 = arith.constant 0 : index
    %7 = vector.load %arg1[%c2, %c0_7, %c0_8] : memref<8x32x128xbf16, #tpu.memory_space<vmem>>, vector<1x32x128xbf16>
    %8 = vector.shape_cast %7 : vector<1x32x128xbf16> to vector<32x128xbf16>
    %cst_9 = arith.constant dense<0.000000e+00> : vector<16x128xf32>
    %9 = tpu.matmul %0, %8, %cst_9 {dimension_numbers = #tpu.dot_dimension_numbers<[1], [0], [0], [1], [0, 0, 1, 1], [], []>} : vector<16x32xbf16>, vector<32x128xbf16>, vector<16x128xf32> -> vector<16x128xf32>
    %10 = arith.maximumf %3, %9 : vector<16x128xf32>
    %c3 = arith.constant 3 : index
    %c0_10 = arith.constant 0 : index
    %c0_11 = arith.constant 0 : index
    %11 = vector.load %arg1[%c3, %c0_10, %c0_11] : memref<8x32x128xbf16, #tpu.memory_space<vmem>>, vector<1x32x128xbf16>
    %12 = vector.shape_cast %11 : vector<1x32x128xbf16> to vector<32x128xbf16>
    %cst_12 = arith.constant dense<0.000000e+00> : vector<16x128xf32>
    %13 = tpu.matmul %0, %12, %cst_12 {dimension_numbers = #tpu.dot_dimension_numbers<[1], [0], [0], [1], [0, 0, 1, 1], [], []>} : vector<16x32xbf16>, vector<32x128xbf16>, vector<16x128xf32> -> vector<16x128xf32>
    %14 = arith.maximumf %6, %13 : vector<16x128xf32>
    %c4 = arith.constant 4 : index
    %c0_13 = arith.constant 0 : index
    %c0_14 = arith.constant 0 : index
    %15 = vector.load %arg1[%c4, %c0_13, %c0_14] : memref<8x32x128xbf16, #tpu.memory_space<vmem>>, vector<1x32x128xbf16>
    %16 = vector.shape_cast %15 : vector<1x32x128xbf16> to vector<32x128xbf16>
    %cst_15 = arith.constant dense<0.000000e+00> : vector<16x128xf32>
    %17 = tpu.matmul %0, %16, %cst_15 {dimension_numbers = #tpu.dot_dimension_numbers<[1], [0], [0], [1], [0, 0, 1, 1], [], []>} : vector<16x32xbf16>, vector<32x128xbf16>, vector<16x128xf32> -> vector<16x128xf32>
    %18 = arith.maximumf %10, %17 : vector<16x128xf32>
    %c5 = arith.constant 5 : index
    %c0_16 = arith.constant 0 : index
    %c0_17 = arith.constant 0 : index
    %19 = vector.load %arg1[%c5, %c0_16, %c0_17] : memref<8x32x128xbf16, #tpu.memory_space<vmem>>, vector<1x32x128xbf16>
    %20 = vector.shape_cast %19 : vector<1x32x128xbf16> to vector<32x128xbf16>
    %cst_18 = arith.constant dense<0.000000e+00> : vector<16x128xf32>
    %21 = tpu.matmul %0, %20, %cst_18 {dimension_numbers = #tpu.dot_dimension_numbers<[1], [0], [0], [1], [0, 0, 1, 1], [], []>} : vector<16x32xbf16>, vector<32x128xbf16>, vector<16x128xf32> -> vector<16x128xf32>
    %22 = arith.maximumf %14, %21 : vector<16x128xf32>
    %c6 = arith.constant 6 : index
    %c0_19 = arith.constant 0 : index
    %c0_20 = arith.constant 0 : index
    %23 = vector.load %arg1[%c6, %c0_19, %c0_20] : memref<8x32x128xbf16, #tpu.memory_space<vmem>>, vector<1x32x128xbf16>
    %24 = vector.shape_cast %23 : vector<1x32x128xbf16> to vector<32x128xbf16>
    %cst_21 = arith.constant dense<0.000000e+00> : vector<16x128xf32>
    %25 = tpu.matmul %0, %24, %cst_21 {dimension_numbers = #tpu.dot_dimension_numbers<[1], [0], [0], [1], [0, 0, 1, 1], [], []>} : vector<16x32xbf16>, vector<32x128xbf16>, vector<16x128xf32> -> vector<16x128xf32>
    %26 = arith.maximumf %18, %25 : vector<16x128xf32>
    %c7 = arith.constant 7 : index
    %c0_22 = arith.constant 0 : index
    %c0_23 = arith.constant 0 : index
    %27 = vector.load %arg1[%c7, %c0_22, %c0_23] : memref<8x32x128xbf16, #tpu.memory_space<vmem>>, vector<1x32x128xbf16>
    %28 = vector.shape_cast %27 : vector<1x32x128xbf16> to vector<32x128xbf16>
    %cst_24 = arith.constant dense<0.000000e+00> : vector<16x128xf32>
    %29 = tpu.matmul %0, %28, %cst_24 {dimension_numbers = #tpu.dot_dimension_numbers<[1], [0], [0], [1], [0, 0, 1, 1], [], []>} : vector<16x32xbf16>, vector<32x128xbf16>, vector<16x128xf32> -> vector<16x128xf32>
    %30 = arith.maximumf %22, %29 : vector<16x128xf32>
    %31 = arith.maximumf %26, %30 : vector<16x128xf32>
    %c0_25 = arith.constant 0 : index
    %c0_26 = arith.constant 0 : index
    %32 = vector.load %arg4[%c0_25, %c0_26] : memref<16x1xf32, #tpu.memory_space<vmem>>, vector<16x1xf32>
    %33 = vector.broadcast %32 : vector<16x1xf32> to vector<16x128xf32>
    %34 = arith.addf %31, %33 : vector<16x128xf32>
    %cst_27 = arith.constant 0.000000e+00 : f32
    %35 = vector.broadcast %cst_27 : f32 to vector<16x128xf32>
    %36 = arith.maximumf %34, %35 : vector<16x128xf32>
    %c0_28 = arith.constant 0 : index
    %c0_29 = arith.constant 0 : index
    %37 = vector.load %arg5[%c0_28, %c0_29] : memref<64x16xbf16, #tpu.memory_space<vmem>>, vector<64x16xbf16>
    %38 = arith.truncf %36 : vector<16x128xf32> to vector<16x128xbf16>
    %cst_30 = arith.constant dense<0.000000e+00> : vector<64x128xf32>
    %39 = tpu.matmul %37, %38, %cst_30 {dimension_numbers = #tpu.dot_dimension_numbers<[1], [0], [0], [1], [0, 0, 1, 1], [], []>} : vector<64x16xbf16>, vector<16x128xbf16>, vector<64x128xf32> -> vector<64x128xf32>
    %c0_31 = arith.constant 0 : index
    %c0_32 = arith.constant 0 : index
    %40 = vector.load %arg6[%c0_31, %c0_32] : memref<64x1xf32, #tpu.memory_space<vmem>>, vector<64x1xf32>
    %41 = vector.broadcast %40 : vector<64x1xf32> to vector<64x128xf32>
    %42 = arith.addf %39, %41 : vector<64x128xf32>
    %cst_33 = arith.constant 0.000000e+00 : f32
    %43 = vector.broadcast %cst_33 : f32 to vector<64x128xf32>
    %44 = arith.maximumf %42, %43 : vector<64x128xf32>
    %c0_34 = arith.constant 0 : index
    %c0_35 = arith.constant 0 : index
    %45 = vector.load %arg7[%c0_34, %c0_35] : memref<16x64xbf16, #tpu.memory_space<vmem>>, vector<16x64xbf16>
    %46 = arith.truncf %44 : vector<64x128xf32> to vector<64x128xbf16>
    %cst_36 = arith.constant dense<0.000000e+00> : vector<16x128xf32>
    %47 = tpu.matmul %45, %46, %cst_36 {dimension_numbers = #tpu.dot_dimension_numbers<[1], [0], [0], [1], [0, 0, 1, 1], [], []>} : vector<16x64xbf16>, vector<64x128xbf16>, vector<16x128xf32> -> vector<16x128xf32>
    %c0_37 = arith.constant 0 : index
    %c0_38 = arith.constant 0 : index
    %48 = vector.load %arg8[%c0_37, %c0_38] : memref<16x1xf32, #tpu.memory_space<vmem>>, vector<16x1xf32>
    %49 = vector.broadcast %48 : vector<16x1xf32> to vector<16x128xf32>
    %50 = arith.addf %47, %49 : vector<16x128xf32>
    %c0_39 = arith.constant 0 : index
    %c0_40 = arith.constant 0 : index
    %51 = vector.load %arg2[%c0_39, %c0_40] : memref<16x128xbf16, #tpu.memory_space<vmem>>, vector<16x128xbf16>
    %52 = arith.extf %51 : vector<16x128xbf16> to vector<16x128xf32>
    %53 = arith.addf %50, %52 : vector<16x128xf32>
    %cst_41 = arith.constant 0.000000e+00 : f32
    %54 = vector.broadcast %cst_41 : f32 to vector<16x128xf32>
    %55 = arith.maximumf %53, %54 : vector<16x128xf32>
    %56 = arith.truncf %55 : vector<16x128xf32> to vector<16x128xbf16>
    %c0_42 = arith.constant 0 : index
    %c0_43 = arith.constant 0 : index
    %57 = vector.load %arg9[%c0_42, %c0_43] : memref<16x128xbf16, #tpu.memory_space<vmem>>, vector<16x128xbf16>
    tpu.vector_store %arg9[%c0_42, %c0_43], %56 {strides = array<i32>} : memref<16x128xbf16, #tpu.memory_space<vmem>>, vector<16x128xbf16>,
    return
  }
  func.func @transform_0(%arg0: i32) -> (i32, i32, i32) {
    %c0_i32 = arith.constant 0 : i32
    %c0_i32_0 = arith.constant 0 : i32
    %c0_i32_1 = arith.constant 0 : i32
    return %c0_i32, %c0_i32_0, %arg0 : i32, i32, i32
  }
  func.func @transform_1(%arg0: i32) -> (i32, i32) {
    %c0_i32 = arith.constant 0 : i32
    %c0_i32_0 = arith.constant 0 : i32
    return %c0_i32, %arg0 : i32, i32
  }
  func.func @transform_2(%arg0: i32) -> (i32, i32) {
    %c0_i32 = arith.constant 0 : i32
    %c0_i32_0 = arith.constant 0 : i32
    %c0_i32_1 = arith.constant 0 : i32
    return %c0_i32, %c0_i32_0 : i32, i32
  }
  func.func @transform_3(%arg0: i32) -> (i32, i32) {
    %c0_i32 = arith.constant 0 : i32
    %c0_i32_0 = arith.constant 0 : i32
    %c0_i32_1 = arith.constant 0 : i32
    return %c0_i32, %c0_i32_0 : i32, i32
  }
  func.func @transform_4(%arg0: i32) -> (i32, i32) {
    %c0_i32 = arith.constant 0 : i32
    %c0_i32_0 = arith.constant 0 : i32
    %c0_i32_1 = arith.constant 0 : i32
    return %c0_i32, %c0_i32_0 : i32, i32
  }
  func.func @transform_5(%arg0: i32) -> (i32, i32) {
    %c0_i32 = arith.constant 0 : i32
    %c0_i32_0 = arith.constant 0 : i32
    %c0_i32_1 = arith.constant 0 : i32
    return %c0_i32, %c0_i32_0 : i32, i32
  }
  func.func @transform_6(%arg0: i32) -> (i32, i32) {
    %c0_i32 = arith.constant 0 : i32
    %c0_i32_0 = arith.constant 0 : i32
    %c0_i32_1 = arith.constant 0 : i32
    return %c0_i32, %c0_i32_0 : i32, i32
  }
  func.func @transform_7(%arg0: i32) -> (i32, i32) {
    %c0_i32 = arith.constant 0 : i32
    %c0_i32_0 = arith.constant 0 : i32
    %c0_i32_1 = arith.constant 0 : i32
    return %c0_i32, %c0_i32_0 : i32, i32
  }
  func.func @transform_8(%arg0: i32) -> (i32, i32) {
    %c0_i32 = arith.constant 0 : i32
    %c0_i32_0 = arith.constant 0 : i32
    return %c0_i32, %arg0 : i32, i32
  }
}

module attributes {stable_mosaic.version = 11 : i64} {
  func.func @_pconv2_kernel(%arg0: i32, %arg1: memref<16x128xbf16, #tpu.memory_space<vmem>>, %arg2: memref<32x128xbf16, #tpu.memory_space<vmem>>, %arg3: memref<16x16xbf16, #tpu.memory_space<vmem>>, %arg4: memref<16x32xbf16, #tpu.memory_space<vmem>>, %arg5: memref<16x1xf32, #tpu.memory_space<vmem>>, %arg6: memref<16x128xbf16, #tpu.memory_space<vmem>>) attributes {dimension_semantics = [#tpu.dimension_semantics<parallel>], iteration_bounds = array<i64: 2>, scalar_prefetch = 0 : i64, scratch_operands = 0 : i64, tpu.core_type = #tpu.core_type<tc>, window_params = [{transform_indices = @transform_0, window_bounds = array<i64: 16, 128>}, {transform_indices = @transform_1, window_bounds = array<i64: 32, 128>}, {pipeline_mode = #tpu.pipeline_mode<synchronous>, transform_indices = @transform_2, window_bounds = array<i64: 16, 16>}, {pipeline_mode = #tpu.pipeline_mode<synchronous>, transform_indices = @transform_3, window_bounds = array<i64: 16, 32>}, {pipeline_mode = #tpu.pipeline_mode<synchronous>, transform_indices = @transform_4, window_bounds = array<i64: 16, 1>}, {transform_indices = @transform_5, window_bounds = array<i64: 16, 128>}]} {
    %c0 = arith.constant 0 : index
    %c0_0 = arith.constant 0 : index
    %0 = vector.load %arg3[%c0, %c0_0] : memref<16x16xbf16, #tpu.memory_space<vmem>>, vector<16x16xbf16>
    %c0_1 = arith.constant 0 : index
    %c0_2 = arith.constant 0 : index
    %1 = vector.load %arg1[%c0_1, %c0_2] : memref<16x128xbf16, #tpu.memory_space<vmem>>, vector<16x128xbf16>
    %cst = arith.constant dense<0.000000e+00> : vector<16x128xf32>
    %2 = tpu.matmul %0, %1, %cst {dimension_numbers = #tpu.dot_dimension_numbers<[1], [0], [0], [1], [0, 0, 1, 1], [], []>} : vector<16x16xbf16>, vector<16x128xbf16>, vector<16x128xf32> -> vector<16x128xf32>
    %c0_3 = arith.constant 0 : index
    %c0_4 = arith.constant 0 : index
    %3 = vector.load %arg4[%c0_3, %c0_4] : memref<16x32xbf16, #tpu.memory_space<vmem>>, vector<16x32xbf16>
    %c0_5 = arith.constant 0 : index
    %c0_6 = arith.constant 0 : index
    %4 = vector.load %arg2[%c0_5, %c0_6] : memref<32x128xbf16, #tpu.memory_space<vmem>>, vector<32x128xbf16>
    %cst_7 = arith.constant dense<0.000000e+00> : vector<16x128xf32>
    %5 = tpu.matmul %3, %4, %cst_7 {dimension_numbers = #tpu.dot_dimension_numbers<[1], [0], [0], [1], [0, 0, 1, 1], [], []>} : vector<16x32xbf16>, vector<32x128xbf16>, vector<16x128xf32> -> vector<16x128xf32>
    %6 = arith.addf %2, %5 : vector<16x128xf32>
    %c0_8 = arith.constant 0 : index
    %c0_9 = arith.constant 0 : index
    %7 = vector.load %arg5[%c0_8, %c0_9] : memref<16x1xf32, #tpu.memory_space<vmem>>, vector<16x1xf32>
    %8 = vector.broadcast %7 : vector<16x1xf32> to vector<16x128xf32>
    %9 = arith.addf %6, %8 : vector<16x128xf32>
    %cst_10 = arith.constant 0.000000e+00 : f32
    %10 = vector.broadcast %cst_10 : f32 to vector<16x128xf32>
    %11 = arith.maximumf %9, %10 : vector<16x128xf32>
    %12 = arith.truncf %11 : vector<16x128xf32> to vector<16x128xbf16>
    %c0_11 = arith.constant 0 : index
    %c0_12 = arith.constant 0 : index
    %13 = vector.load %arg6[%c0_11, %c0_12] : memref<16x128xbf16, #tpu.memory_space<vmem>>, vector<16x128xbf16>
    tpu.vector_store %arg6[%c0_11, %c0_12], %12 {strides = array<i32>} : memref<16x128xbf16, #tpu.memory_space<vmem>>, vector<16x128xbf16>,
    return
  }
  func.func @transform_0(%arg0: i32) -> (i32, i32) {
    %c0_i32 = arith.constant 0 : i32
    %c0_i32_0 = arith.constant 0 : i32
    return %c0_i32, %arg0 : i32, i32
  }
  func.func @transform_1(%arg0: i32) -> (i32, i32) {
    %c0_i32 = arith.constant 0 : i32
    %c0_i32_0 = arith.constant 0 : i32
    return %c0_i32, %arg0 : i32, i32
  }
  func.func @transform_2(%arg0: i32) -> (i32, i32) {
    %c0_i32 = arith.constant 0 : i32
    %c0_i32_0 = arith.constant 0 : i32
    %c0_i32_1 = arith.constant 0 : i32
    return %c0_i32, %c0_i32_0 : i32, i32
  }
  func.func @transform_3(%arg0: i32) -> (i32, i32) {
    %c0_i32 = arith.constant 0 : i32
    %c0_i32_0 = arith.constant 0 : i32
    %c0_i32_1 = arith.constant 0 : i32
    return %c0_i32, %c0_i32_0 : i32, i32
  }
  func.func @transform_4(%arg0: i32) -> (i32, i32) {
    %c0_i32 = arith.constant 0 : i32
    %c0_i32_0 = arith.constant 0 : i32
    %c0_i32_1 = arith.constant 0 : i32
    return %c0_i32, %c0_i32_0 : i32, i32
  }
  func.func @transform_5(%arg0: i32) -> (i32, i32) {
    %c0_i32 = arith.constant 0 : i32
    %c0_i32_0 = arith.constant 0 : i32
    return %c0_i32, %arg0 : i32, i32
  }
}

module attributes {stable_mosaic.version = 11 : i64} {
  func.func @_pconv_kernel(%arg0: i32, %arg1: memref<16x128xbf16, #tpu.memory_space<vmem>>, %arg2: memref<16x16xbf16, #tpu.memory_space<vmem>>, %arg3: memref<16x1xf32, #tpu.memory_space<vmem>>, %arg4: memref<16x128xf32, #tpu.memory_space<vmem>>) attributes {dimension_semantics = [#tpu.dimension_semantics<parallel>], iteration_bounds = array<i64: 2>, scalar_prefetch = 0 : i64, scratch_operands = 0 : i64, tpu.core_type = #tpu.core_type<tc>, window_params = [{transform_indices = @transform_0, window_bounds = array<i64: 16, 128>}, {pipeline_mode = #tpu.pipeline_mode<synchronous>, transform_indices = @transform_1, window_bounds = array<i64: 16, 16>}, {pipeline_mode = #tpu.pipeline_mode<synchronous>, transform_indices = @transform_2, window_bounds = array<i64: 16, 1>}, {transform_indices = @transform_3, window_bounds = array<i64: 16, 128>}]} {
    %c0 = arith.constant 0 : index
    %c0_0 = arith.constant 0 : index
    %0 = vector.load %arg2[%c0, %c0_0] : memref<16x16xbf16, #tpu.memory_space<vmem>>, vector<16x16xbf16>
    %c0_1 = arith.constant 0 : index
    %c0_2 = arith.constant 0 : index
    %1 = vector.load %arg1[%c0_1, %c0_2] : memref<16x128xbf16, #tpu.memory_space<vmem>>, vector<16x128xbf16>
    %cst = arith.constant dense<0.000000e+00> : vector<16x128xf32>
    %2 = tpu.matmul %0, %1, %cst {dimension_numbers = #tpu.dot_dimension_numbers<[1], [0], [0], [1], [0, 0, 1, 1], [], []>} : vector<16x16xbf16>, vector<16x128xbf16>, vector<16x128xf32> -> vector<16x128xf32>
    %c0_3 = arith.constant 0 : index
    %c0_4 = arith.constant 0 : index
    %3 = vector.load %arg3[%c0_3, %c0_4] : memref<16x1xf32, #tpu.memory_space<vmem>>, vector<16x1xf32>
    %4 = vector.broadcast %3 : vector<16x1xf32> to vector<16x128xf32>
    %5 = arith.addf %2, %4 : vector<16x128xf32>
    %c0_5 = arith.constant 0 : index
    %c0_6 = arith.constant 0 : index
    %6 = vector.load %arg4[%c0_5, %c0_6] : memref<16x128xf32, #tpu.memory_space<vmem>>, vector<16x128xf32>
    tpu.vector_store %arg4[%c0_5, %c0_6], %5 {strides = array<i32>} : memref<16x128xf32, #tpu.memory_space<vmem>>, vector<16x128xf32>,
    return
  }
  func.func @transform_0(%arg0: i32) -> (i32, i32) {
    %c0_i32 = arith.constant 0 : i32
    %c0_i32_0 = arith.constant 0 : i32
    return %c0_i32, %arg0 : i32, i32
  }
  func.func @transform_1(%arg0: i32) -> (i32, i32) {
    %c0_i32 = arith.constant 0 : i32
    %c0_i32_0 = arith.constant 0 : i32
    %c0_i32_1 = arith.constant 0 : i32
    return %c0_i32, %c0_i32_0 : i32, i32
  }
  func.func @transform_2(%arg0: i32) -> (i32, i32) {
    %c0_i32 = arith.constant 0 : i32
    %c0_i32_0 = arith.constant 0 : i32
    %c0_i32_1 = arith.constant 0 : i32
    return %c0_i32, %c0_i32_0 : i32, i32
  }
  func.func @transform_3(%arg0: i32) -> (i32, i32) {
    %c0_i32 = arith.constant 0 : i32
    %c0_i32_0 = arith.constant 0 : i32
    return %c0_i32, %arg0 : i32, i32
  }
}

module attributes {stable_mosaic.version = 11 : i64} {
  func.func @_pconv2_kernel(%arg0: i32, %arg1: memref<8x512xbf16, #tpu.memory_space<vmem>>, %arg2: memref<16x512xbf16, #tpu.memory_space<vmem>>, %arg3: memref<8x8xbf16, #tpu.memory_space<vmem>>, %arg4: memref<8x16xbf16, #tpu.memory_space<vmem>>, %arg5: memref<8x1xf32, #tpu.memory_space<vmem>>, %arg6: memref<8x512xbf16, #tpu.memory_space<vmem>>) attributes {dimension_semantics = [#tpu.dimension_semantics<parallel>], iteration_bounds = array<i64: 2>, scalar_prefetch = 0 : i64, scratch_operands = 0 : i64, tpu.core_type = #tpu.core_type<tc>, window_params = [{transform_indices = @transform_0, window_bounds = array<i64: 8, 512>}, {transform_indices = @transform_1, window_bounds = array<i64: 16, 512>}, {pipeline_mode = #tpu.pipeline_mode<synchronous>, transform_indices = @transform_2, window_bounds = array<i64: 8, 8>}, {pipeline_mode = #tpu.pipeline_mode<synchronous>, transform_indices = @transform_3, window_bounds = array<i64: 8, 16>}, {pipeline_mode = #tpu.pipeline_mode<synchronous>, transform_indices = @transform_4, window_bounds = array<i64: 8, 1>}, {transform_indices = @transform_5, window_bounds = array<i64: 8, 512>}]} {
    %c0 = arith.constant 0 : index
    %c0_0 = arith.constant 0 : index
    %0 = vector.load %arg3[%c0, %c0_0] : memref<8x8xbf16, #tpu.memory_space<vmem>>, vector<8x8xbf16>
    %c0_1 = arith.constant 0 : index
    %c0_2 = arith.constant 0 : index
    %1 = vector.load %arg1[%c0_1, %c0_2] : memref<8x512xbf16, #tpu.memory_space<vmem>>, vector<8x512xbf16>
    %cst = arith.constant dense<0.000000e+00> : vector<8x512xf32>
    %2 = tpu.matmul %0, %1, %cst {dimension_numbers = #tpu.dot_dimension_numbers<[1], [0], [0], [1], [0, 0, 1, 1], [], []>} : vector<8x8xbf16>, vector<8x512xbf16>, vector<8x512xf32> -> vector<8x512xf32>
    %c0_3 = arith.constant 0 : index
    %c0_4 = arith.constant 0 : index
    %3 = vector.load %arg4[%c0_3, %c0_4] : memref<8x16xbf16, #tpu.memory_space<vmem>>, vector<8x16xbf16>
    %c0_5 = arith.constant 0 : index
    %c0_6 = arith.constant 0 : index
    %4 = vector.load %arg2[%c0_5, %c0_6] : memref<16x512xbf16, #tpu.memory_space<vmem>>, vector<16x512xbf16>
    %cst_7 = arith.constant dense<0.000000e+00> : vector<8x512xf32>
    %5 = tpu.matmul %3, %4, %cst_7 {dimension_numbers = #tpu.dot_dimension_numbers<[1], [0], [0], [1], [0, 0, 1, 1], [], []>} : vector<8x16xbf16>, vector<16x512xbf16>, vector<8x512xf32> -> vector<8x512xf32>
    %6 = arith.addf %2, %5 : vector<8x512xf32>
    %c0_8 = arith.constant 0 : index
    %c0_9 = arith.constant 0 : index
    %7 = vector.load %arg5[%c0_8, %c0_9] : memref<8x1xf32, #tpu.memory_space<vmem>>, vector<8x1xf32>
    %8 = vector.broadcast %7 : vector<8x1xf32> to vector<8x512xf32>
    %9 = arith.addf %6, %8 : vector<8x512xf32>
    %cst_10 = arith.constant 0.000000e+00 : f32
    %10 = vector.broadcast %cst_10 : f32 to vector<8x512xf32>
    %11 = arith.maximumf %9, %10 : vector<8x512xf32>
    %12 = arith.truncf %11 : vector<8x512xf32> to vector<8x512xbf16>
    %c0_11 = arith.constant 0 : index
    %c0_12 = arith.constant 0 : index
    %13 = vector.load %arg6[%c0_11, %c0_12] : memref<8x512xbf16, #tpu.memory_space<vmem>>, vector<8x512xbf16>
    tpu.vector_store %arg6[%c0_11, %c0_12], %12 {strides = array<i32>} : memref<8x512xbf16, #tpu.memory_space<vmem>>, vector<8x512xbf16>,
    return
  }
  func.func @transform_0(%arg0: i32) -> (i32, i32) {
    %c0_i32 = arith.constant 0 : i32
    %c0_i32_0 = arith.constant 0 : i32
    return %c0_i32, %arg0 : i32, i32
  }
  func.func @transform_1(%arg0: i32) -> (i32, i32) {
    %c0_i32 = arith.constant 0 : i32
    %c0_i32_0 = arith.constant 0 : i32
    return %c0_i32, %arg0 : i32, i32
  }
  func.func @transform_2(%arg0: i32) -> (i32, i32) {
    %c0_i32 = arith.constant 0 : i32
    %c0_i32_0 = arith.constant 0 : i32
    %c0_i32_1 = arith.constant 0 : i32
    return %c0_i32, %c0_i32_0 : i32, i32
  }
  func.func @transform_3(%arg0: i32) -> (i32, i32) {
    %c0_i32 = arith.constant 0 : i32
    %c0_i32_0 = arith.constant 0 : i32
    %c0_i32_1 = arith.constant 0 : i32
    return %c0_i32, %c0_i32_0 : i32, i32
  }
  func.func @transform_4(%arg0: i32) -> (i32, i32) {
    %c0_i32 = arith.constant 0 : i32
    %c0_i32_0 = arith.constant 0 : i32
    %c0_i32_1 = arith.constant 0 : i32
    return %c0_i32, %c0_i32_0 : i32, i32
  }
  func.func @transform_5(%arg0: i32) -> (i32, i32) {
    %c0_i32 = arith.constant 0 : i32
    %c0_i32_0 = arith.constant 0 : i32
    return %c0_i32, %arg0 : i32, i32
  }
}

module attributes {stable_mosaic.version = 11 : i64} {
  func.func @_pconv_kernel(%arg0: i32, %arg1: memref<8x512xbf16, #tpu.memory_space<vmem>>, %arg2: memref<16x8xbf16, #tpu.memory_space<vmem>>, %arg3: memref<16x1xf32, #tpu.memory_space<vmem>>, %arg4: memref<16x512xf32, #tpu.memory_space<vmem>>) attributes {dimension_semantics = [#tpu.dimension_semantics<parallel>], iteration_bounds = array<i64: 2>, scalar_prefetch = 0 : i64, scratch_operands = 0 : i64, tpu.core_type = #tpu.core_type<tc>, window_params = [{transform_indices = @transform_0, window_bounds = array<i64: 8, 512>}, {pipeline_mode = #tpu.pipeline_mode<synchronous>, transform_indices = @transform_1, window_bounds = array<i64: 16, 8>}, {pipeline_mode = #tpu.pipeline_mode<synchronous>, transform_indices = @transform_2, window_bounds = array<i64: 16, 1>}, {transform_indices = @transform_3, window_bounds = array<i64: 16, 512>}]} {
    %c0 = arith.constant 0 : index
    %c0_0 = arith.constant 0 : index
    %0 = vector.load %arg2[%c0, %c0_0] : memref<16x8xbf16, #tpu.memory_space<vmem>>, vector<16x8xbf16>
    %c0_1 = arith.constant 0 : index
    %c0_2 = arith.constant 0 : index
    %1 = vector.load %arg1[%c0_1, %c0_2] : memref<8x512xbf16, #tpu.memory_space<vmem>>, vector<8x512xbf16>
    %cst = arith.constant dense<0.000000e+00> : vector<16x512xf32>
    %2 = tpu.matmul %0, %1, %cst {dimension_numbers = #tpu.dot_dimension_numbers<[1], [0], [0], [1], [0, 0, 1, 1], [], []>} : vector<16x8xbf16>, vector<8x512xbf16>, vector<16x512xf32> -> vector<16x512xf32>
    %c0_3 = arith.constant 0 : index
    %c0_4 = arith.constant 0 : index
    %3 = vector.load %arg3[%c0_3, %c0_4] : memref<16x1xf32, #tpu.memory_space<vmem>>, vector<16x1xf32>
    %4 = vector.broadcast %3 : vector<16x1xf32> to vector<16x512xf32>
    %5 = arith.addf %2, %4 : vector<16x512xf32>
    %c0_5 = arith.constant 0 : index
    %c0_6 = arith.constant 0 : index
    %6 = vector.load %arg4[%c0_5, %c0_6] : memref<16x512xf32, #tpu.memory_space<vmem>>, vector<16x512xf32>
    tpu.vector_store %arg4[%c0_5, %c0_6], %5 {strides = array<i32>} : memref<16x512xf32, #tpu.memory_space<vmem>>, vector<16x512xf32>,
    return
  }
  func.func @transform_0(%arg0: i32) -> (i32, i32) {
    %c0_i32 = arith.constant 0 : i32
    %c0_i32_0 = arith.constant 0 : i32
    return %c0_i32, %arg0 : i32, i32
  }
  func.func @transform_1(%arg0: i32) -> (i32, i32) {
    %c0_i32 = arith.constant 0 : i32
    %c0_i32_0 = arith.constant 0 : i32
    %c0_i32_1 = arith.constant 0 : i32
    return %c0_i32, %c0_i32_0 : i32, i32
  }
  func.func @transform_2(%arg0: i32) -> (i32, i32) {
    %c0_i32 = arith.constant 0 : i32
    %c0_i32_0 = arith.constant 0 : i32
    %c0_i32_1 = arith.constant 0 : i32
    return %c0_i32, %c0_i32_0 : i32, i32
  }
  func.func @transform_3(%arg0: i32) -> (i32, i32) {
    %c0_i32 = arith.constant 0 : i32
    %c0_i32_0 = arith.constant 0 : i32
    return %c0_i32, %arg0 : i32, i32
  }
}

</mosaic_0001>

<bundles_post_ra>
// kernel: _lambda_.7
= control target key start
LH: loop header
LB: loop body
LE: loop exit
PB: predicated region body
PF: predicated region fallthrough
CT: control target
= control target key end

     0   :  { %s439_s12 = smov 0   ;;  %s466_s0 = inlined_call_operand.vmem [shape: bf16[4,1024], index: 0, kind: input, shape index: {}]   ;;  %s467_s1 = inlined_call_operand.vmem [shape: bf16[8,4], index: 1, kind: input, shape index: {}]   ;;  %s468_s2 = inlined_call_operand.vmem [shape: f32[8,1], index: 2, kind: input, shape index: {}]   ;;  %s469_s3 = inlined_call_operand.vmem [shape: bf16[8,1024], index: 3, kind: output, shape index: {}]  }
   0x1 LB: > { %s378_s13 = sadd.s32 4294967295, %s415_s12   ;;  %p382_p0 = scmp.ge.s32.totalorder %s415_s12, 1  ;;  %s415_s12 = sphi %s439_s12, %s13_s12  }
   0x2   : > { %p138_p1 = scmp.lt.s32.totalorder %s415_s12, 3 }
   0x4   : > { %p139_p2 = pnand %p382_p0, %p138_p1 }
   0x5   : > { %s383_s14 = sshll.u32 (!%p139_p2), %s378_s13, 2 }
   0x6   : > { %142 = sbr.rel (%p139_p2) target bundleno = 228 (0xe4), region = 32  ;;  %p163_p3 = scmp.lt.s32.totalorder (!%p139_p2), %s383_s14, 7 }
   0xb   : > { %v188_v0 = vlaneseq  ;;  %v177_v1 = vld [vmem:[%s468_s2] sm:$0xff]  ;;  %v417_v2 = vmov 1983009808   ;;  %v418_v4 = vmov 0   ;;  %s471_s14 = smov (!%p163_p3, %s383_s14), 7  ;;  %vm205_vm0 = vcmask 1041408  }
   0xc   : > { %v186_v3 = vunpack.c.l.s4 %v417_v2  ;;  %250 = vmatprep.mubr.bf16.mxu0 %v418_v4  ;;  %291 = vmatprep.mubr.bf16.mxu1 %v418_v4  ;;  %s384_s17 = sshll.u32 %s471_s14, 1  ;;  %v175_v16 = vld [vmem:[%s467_s1] sm:$0xf]  ;;  %vm201_vm1 = vcmask 31744   ;;  %s386_s23 = sshll.u32 %s471_s14, 2 }
   0xd   : > { %v189_v5 = vshrl.u32 %v188_v0, 7  ;;  %407 = vset.pattern.permute.xlu0 %v418_v4  ;;  %s166_s20 = scalar_lea.vmem %s466_s0, %s384_s17  ;;  %s172_s26 = scalar_lea.vmem %s469_s3, %s386_s23 }
   0xe   : > { %v187_v6 = vunpack.c.0.s8 %v186_v3  ;;  %180 = vperm.xlu0 %407, %v177_v1   ;;  %v176_v8 = vld [vmem:[%s166_s20] sm:$0xff] }
   0xf   : > { %v184_v10 = vcombine.high %v176_v8, %v176_v8 }
  0x10   : > { %v190_v7 = vsub.s32 %v187_v6, %v189_v5 }
  0x12   : > { %v191_v9 = vrot.slane %v176_v8, %v190_v7  ;;  %v198_v13 = vrot.slane %v184_v10, %v190_v7 }
  0x14   : > { %v199_v11 = vcombine.high %v191_v9, %v191_v9  ;;  %v207_v12 = vsel %vm205_vm0, %v191_v9, 0  ;;  %v200_v14 = vcombine.high %v198_v13, %v198_v13  ;;  %v213_v15 = vsel %vm205_vm0, %v198_v13, 0 }
  0x16   : > { %387 = vmatprep.subr.msk.bf16.mxu0 %vm205_vm0, %v199_v11  ;;  %389 = vmatprep.subr.msk.bf16.mxu1 %vm205_vm0, %v200_v14 }
  0x17   : > { %233 = vmatpush1.bf16.msra.mxu0 %v207_v12  ;;  %274 = vmatpush1.bf16.msra.mxu1 %v213_v15 }
  0x1a   : > { %388 = vmatmul.mubr.msk.bf16.vlgmr.msra.gmra.mxu0 %vm201_vm1, %v175_v16  ;;  %390 = vmatmul.mubr.msk.bf16.vlgmr.msra.gmra.mxu1 %vm201_vm1, %v175_v16 }
  0x89   : > { %v181_v17 = vpop.permute.xlu0 %180 }
  0xda   : > { %v252_v18 = vpop.f32.mrf.mxu0  ;;  %v293_v21 = vpop.f32.mrf.mxu1 }
  0xdb   : > { %v253_v19 = vadd.f32 %v252_v18, %v181_v17  ;;  %v294_v24 = vadd.f32 %v293_v21, %v181_v17 }
  0xdc   : > { %v254_v20 = vpop.f32.mrf.mxu0  ;;  %v295_v26 = vpop.f32.mrf.mxu1 }
  0xdd   : > { %v300_v22 = vmax.f32 %v253_v19, 0.0  ;;  %v255_v23 = vadd.f32 %v254_v20, %v181_v17  ;;  %v296_v28 = vadd.f32 %v295_v26, %v181_v17  ;;  %v302_v32 = vmax.f32 %v294_v24, 0.0 }
  0xde   : > { %v256_v25 = vpop.f32.mrf.mxu0  ;;  %v297_v30 = vpop.f32.mrf.mxu1 }
  0xdf   : > { %v301_v27 = vmax.f32 %v255_v23, 0.0  ;;  %v303_v33 = vmax.f32 %v296_v28, 0.0 }
  0xe0   : > { %v257_v29 = vpop.f32.mrf.mxu0  ;;  %v298_v34 = vpop.f32.mrf.mxu1 }
  0xe1   : > { %v395_v31 = vpack.c.bf16 %v301_v27, %v300_v22  ;;  %v396_v35 = vpack.c.bf16 %v303_v33, %v302_v32 }
  0xe3   : > { %320 = vst [vmem:[%s172_s26] sm:$0xff] %v395_v31  ;;  %321 = vst [vmem:[%s172_s26 + $0x8] sm:$0xff] %v396_v35 }
  0xe4 PF: > { %s13_s12 = sadd.s32 1, %s415_s12  }
  0xe5   : > { %p10_p4 = scmp.ge.s32.totalorder %s13_s12, 4  }
  0xe7   :  { %12 = sbr.rel (!%p10_p4) target bundleno = 1 (0x1), region = 62 }

// kernel: _lambda_.8
= control target key start
LH: loop header
LB: loop body
LE: loop exit
PB: predicated region body
PF: predicated region fallthrough
CT: control target
= control target key end

     0   :  { %s1030_s12 = smov 0   ;;  %s1032_s13 = smov 0   ;;  %s1147_s0 = inlined_call_operand.vmem [shape: bf16[8,16,256], index: 0, kind: input, shape index: {}]   ;;  %s1148_s1 = inlined_call_operand.vmem [shape: bf16[16,16], index: 1, kind: input, shape index: {}]   ;;  %s1149_s2 = inlined_call_operand.vmem [shape: f32[16,1], index: 2, kind: input, shape index: {}]   ;;  %s1150_s3 = inlined_call_operand.vmem [shape: bf16[16,256], index: 3, kind: output, shape index: {}]  }
   0x1   :  { %s1034_s14 = smov 0  }
   0x2 LB: > { %s829_s15 = sadd.s32 4294967295, %s1005_s14   ;;  %s1047_s16 = sadd.s32 1, %s1005_s14   ;;  %s1005_s14 = sphi %s1034_s14, %s1154_s14   ;;  %s1001_s13 = sphi %s1032_s13, %s1153_s13   ;;  %s997_s12 = sphi %s1030_s12, %s1152_s12  }
   0x3   : > { %s17_s17 = ssub.s32 %s1005_s14, %s1047_s16  ;;  %s20_s18 = sadd.s32 1, %s1001_s13 }
   0x4   : > { %p18_p0 = scmp.eq.s32.totalorder %s17_s17, 0  ;;  %p27_p1 = scmp.ne.s32.totalorder %s1001_s13, %s997_s12 }
   0x5   : > { %p28_p2 = scmp.eq.s32.totalorder %s1005_s14, 0  ;;  %p99_p3 = scmp.eq.s32.totalorder %s829_s15, 1 }
   0x6   : > { %s1058_s19 = scalar_select %p18_p0, %s1001_s13, %s20_s18  }
   0x7   : > { %p29_p4 = por %p28_p2, %p27_p1  ;;  %p1060_p5 = por %p99_p3, %p27_p1 }
   0x8   : > { %p832_p6 = scmp.ge.s32.totalorder %s1005_s14, 2 }
   0xa   : > { %127 = sbr.rel (%p832_p6) target bundleno = 29 (0x1d), region = 24 }
   0xf   : > { %130 = sbr.rel (!%p29_p4) target bundleno = 29 (0x1d), region = 28  ;;  %s132_s21 = sand.u32 (%p29_p4), 1, %s1001_s13  }
  0x10   : > { %s834_s22 = sshll.u32 (%p29_p4), %s1005_s14, 2  ;;  %s833_s23 = sshll.u32 (%p29_p4), %s132_s21, 6 }
  0x11   : > { %s1070_s26 = scalar_lea.vmem (%p29_p4), %s1147_s0, %s834_s22  ;;  %s134_s27 = scalar_lea.vmem (%p29_p4), [#allocation2], %s833_s23 }
  0x12   : > { %v153_v0 = vld [vmem:[%s1070_s26] sm:$0xf] (%p29_p4)  ;;  %v155_v1 = vld [vmem:[%s1070_s26 + $0x8] sm:$0xf] (%p29_p4)  ;;  %v157_v2 = vld [vmem:[%s1070_s26 + $0x10] sm:$0xf] (%p29_p4) }
  0x13   : > { %154 = vst [vmem:[%s134_s27] sm:$0xf] (%p29_p4), %v153_v0  ;;  %156 = vst [vmem:[%s134_s27 + $0x4] sm:$0xf] (%p29_p4), %v155_v1  ;;  %v159_v3 = vld [vmem:[%s1070_s26 + $0x18] sm:$0xf] (%p29_p4) }
  0x14   : > { %v161_v4 = vld [vmem:[%s1070_s26 + $0x20] sm:$0xf]  ;;  %158 = vst [vmem:[%s134_s27 + $0x8] sm:$0xf] %v157_v2  ;;  %160 = vst [vmem:[%s134_s27 + $0xc] sm:$0xf] %v159_v3 }
  0x15   : > { %162 = vst [vmem:[%s134_s27 + $0x10] sm:$0xf] %v161_v4  ;;  %v163_v5 = vld [vmem:[%s1070_s26 + $0x28] sm:$0xf]  ;;  %v165_v6 = vld [vmem:[%s1070_s26 + $0x30] sm:$0xf] }
  0x16   : > { %v167_v7 = vld [vmem:[%s1070_s26 + $0x38] sm:$0xf]  ;;  %164 = vst [vmem:[%s134_s27 + $0x14] sm:$0xf] %v163_v5  ;;  %166 = vst [vmem:[%s134_s27 + $0x18] sm:$0xf] %v165_v6 }
  0x17   : > { %168 = vst [vmem:[%s134_s27 + $0x1c] sm:$0xf] %v167_v7  ;;  %v169_v8 = vld [vmem:[%s1070_s26 + $0x40] sm:$0xf]  ;;  %v171_v9 = vld [vmem:[%s1070_s26 + $0x48] sm:$0xf] }
  0x18   : > { %v173_v10 = vld [vmem:[%s1070_s26 + $0x50] sm:$0xf]  ;;  %170 = vst [vmem:[%s134_s27 + $0x20] sm:$0xf] %v169_v8  ;;  %172 = vst [vmem:[%s134_s27 + $0x24] sm:$0xf] %v171_v9 }
  0x19   : > { %174 = vst [vmem:[%s134_s27 + $0x28] sm:$0xf] %v173_v10  ;;  %v175_v11 = vld [vmem:[%s1070_s26 + $0x58] sm:$0xf]  ;;  %v177_v12 = vld [vmem:[%s1070_s26 + $0x60] sm:$0xf] }
  0x1a   : > { %v179_v13 = vld [vmem:[%s1070_s26 + $0x68] sm:$0xf]  ;;  %176 = vst [vmem:[%s134_s27 + $0x2c] sm:$0xf] %v175_v11  ;;  %178 = vst [vmem:[%s134_s27 + $0x30] sm:$0xf] %v177_v12 }
  0x1b   : > { %180 = vst [vmem:[%s134_s27 + $0x34] sm:$0xf] %v179_v13  ;;  %v181_v14 = vld [vmem:[%s1070_s26 + $0x70] sm:$0xf]  ;;  %v183_v15 = vld [vmem:[%s1070_s26 + $0x78] sm:$0xf] }
  0x1c   : > { %182 = vst [vmem:[%s134_s27 + $0x38] sm:$0xf] %v181_v14  ;;  %184 = vst [vmem:[%s134_s27 + $0x3c] sm:$0xf] %v183_v15 }
  0x1d PF: > { %p835_p7 = scmp.ge.s32.totalorder %s1005_s14, 1  ;;  %p239_p8 = scmp.lt.s32.totalorder %s1005_s14, 3 }
  0x1f   : > { %p240_p9 = pnand %p835_p7, %p239_p8 }
  0x20   : > { %s246_s28 = sand.u32 (!%p240_p9), 1, %s997_s12  }
  0x21   : > { %243 = sbr.rel (%p240_p9) target bundleno = 285 (0x11d), region = 69  ;;  %s836_s29 = sshll.u32 (!%p240_p9), %s246_s28, 6 }
  0x22   : > { %s1101_s7 = scalar_lea.vmem (!%p240_p9), [#allocation2], %s836_s29  ;;  %s837_s10 = sshll.u32 (!%p240_p9), %s246_s28, 3 }
  0x23   : > { %s267_s11 = scalar_lea.vmem (!%p240_p9), [#allocation3], %s837_s10 }
  0x26   : > { %v1007_v16 = vmov 0.0   ;;  %v693_v17 = vld [vmem:[%s1149_s2] sm:$0xff]  ;;  %vm1008_vm0 = vmmov 0   ;;  %v1009_v20 = vmov 0   ;;  %v694_v21 = vld [vmem:[%s1149_s2 + $0x8] sm:$0xff]  ;;  %vm284_vm1 = vcmask 130048  }
  0x27   : > { %898 = vmatprep.subr.bf16.mxu0 %v1007_v16  ;;  %904 = vmatprep.subr.bf16.mxu1 %v1007_v16  ;;  %v976_v18 = vld [vmem:[%s1148_s1] sm:$0xff]   ;;  %v975_v22 = vld [vmem:[%s1101_s7 + $0x8] sm:$0xff]   ;;  %v977_v23 = vld [vmem:[%s1101_s7 + $0x10] sm:$0xff]   ;;  %s872_s17 = sshll.u32 (%p1060_p5), %s829_s15, 2 }
  0x28   : > { %900 = vmatprep.mubr.msk.bf16.mxu0 %vm1008_vm0, %v1007_v16  ;;  %906 = vmatprep.mubr.msk.bf16.mxu1 %vm1008_vm0, %v1007_v16  ;;  %v974_v19 = vld [vmem:[%s1101_s7] sm:$0xff]   ;;  %v978_v24 = vld [vmem:[%s1101_s7 + $0x18] sm:$0xff]   ;;  %v980_v26 = vld [vmem:[%s1101_s7 + $0x28] sm:$0xff]   ;;  %s727_s22 = scalar_lea.vmem (%p1060_p5), %s1150_s3, %s872_s17 }
  0x29   : > { %973 = vset.pattern.permute.xlu0 %v1009_v20  ;;  %899 = vmatpush3.bf16.msra.mxu0 %v974_v19  ;;  %v979_v25 = vld [vmem:[%s1101_s7 + $0x20] sm:$0xff]   ;;  %v981_v27 = vld [vmem:[%s1101_s7 + $0x30] sm:$0xff]   ;;  %v982_v28 = vld [vmem:[%s1101_s7 + $0x38] sm:$0xff]  }
  0x2a   : > { %697 = vperm.xlu0 %973, %v693_v17   ;;  %905 = vmatpush3.bf16.msra.mxu1 %v975_v22 }
  0x2b   : > { %910 = vmatprep.subr.bf16.mxu0 %v1007_v16  ;;  %916 = vmatprep.subr.bf16.mxu1 %v1007_v16 }
  0x2c   : > { %901 = vmatmul.mubr.msk.bf16.vlgmr.msra.gmra.mxu0 %vm284_vm1, %v976_v18 }
  0x2d   : > { %907 = vmatmul.mubr.msk.bf16.vlgmr.msra.gmra.mxu1 %vm284_vm1, %v976_v18  ;;  %911 = vmatpush3.bf16.msra.mxu0 %v977_v23 }
  0x2e   : > { %702 = vperm.xlu0 %973, %v694_v21   ;;  %917 = vmatpush3.bf16.msra.mxu1 %v978_v24 }
  0x2f   : > { %912 = vmatprep.mubr.msk.bf16.mxu0 %vm1008_vm0, %v1007_v16  ;;  %918 = vmatprep.mubr.msk.bf16.mxu1 %vm1008_vm0, %v1007_v16 }
  0x30   : > { %922 = vmatprep.subr.bf16.mxu0 %v1007_v16  ;;  %928 = vmatprep.subr.bf16.mxu1 %v1007_v16 }
  0x34   : > { %913 = vmatmul.mubr.msk.bf16.vlgmr.msra.gmra.mxu0 %vm284_vm1, %v976_v18 }
  0x35   : > { %919 = vmatmul.mubr.msk.bf16.vlgmr.msra.gmra.mxu1 %vm284_vm1, %v976_v18  ;;  %923 = vmatpush3.bf16.msra.mxu0 %v979_v25 }
  0x36   : > { %929 = vmatpush3.bf16.msra.mxu1 %v980_v26  ;;  %924 = vmatprep.mubr.msk.bf16.mxu0 %vm1008_vm0, %v1007_v16 }
  0x37   : > { %930 = vmatprep.mubr.msk.bf16.mxu1 %vm1008_vm0, %v1007_v16  ;;  %934 = vmatprep.subr.bf16.mxu0 %v1007_v16 }
  0x38   : > { %940 = vmatprep.subr.bf16.mxu1 %v1007_v16 }
  0x3c   : > { %925 = vmatmul.mubr.msk.bf16.vlgmr.msra.gmra.mxu0 %vm284_vm1, %v976_v18 }
  0x3d   : > { %931 = vmatmul.mubr.msk.bf16.vlgmr.msra.gmra.mxu1 %vm284_vm1, %v976_v18  ;;  %935 = vmatpush3.bf16.msra.mxu0 %v981_v27 }
  0x3e   : > { %941 = vmatpush3.bf16.msra.mxu1 %v982_v28  ;;  %936 = vmatprep.mubr.msk.bf16.mxu0 %vm1008_vm0, %v1007_v16 }
  0x3f   : > { %942 = vmatprep.mubr.msk.bf16.mxu1 %vm1008_vm0, %v1007_v16 }
  0x44   : > { %937 = vmatmul.mubr.msk.bf16.vlgmr.msra.gmra.mxu0 %vm284_vm1, %v976_v18 }
  0x45   : > { %943 = vmatmul.mubr.msk.bf16.vlgmr.msra.gmra.mxu1 %vm284_vm1, %v976_v18 }
  0xa5   : > { %v698_v1 = vpop.permute.xlu0 %697 }
  0xa9   : > { %v703_v13 = vpop.permute.xlu0 %702 }
  0xec   : > { %v322_v29 = vpop.f32.mrf.mxu0 }
  0xed   : > { %v372_v30 = vpop.f32.mrf.mxu1 }
  0xee   : > { %v902_v31 = vpop.f32.mrf.mxu0 }
  0xef   : > { %v908_v32 = vpop.f32.mrf.mxu1 }
  0xf0   : > { %v325_v33 = vpop.f32.mrf.mxu0 }
  0xf1   : > { %v375_v34 = vpop.f32.mrf.mxu1 }
  0xf2   : > { %v903_v35 = vpop.f32.mrf.mxu0 }
  0xf3   : > { %v909_v36 = vpop.f32.mrf.mxu1 }
  0xf4   : > { %v422_v37 = vpop.f32.mrf.mxu0 }
  0xf5   : > { %v474_v38 = vpop.f32.mrf.mxu1  ;;  %v429_v50 = vmax.f32 %v322_v29, %v422_v37 }
  0xf6   : > { %v914_v39 = vpop.f32.mrf.mxu0  ;;  %v481_v52 = vmax.f32 %v372_v30, %v474_v38 }
  0xf7   : > { %v920_v40 = vpop.f32.mrf.mxu1 }
  0xf8   : > { %v425_v41 = vpop.f32.mrf.mxu0 }
  0xf9   : > { %v477_v42 = vpop.f32.mrf.mxu1  ;;  %v430_v58 = vmax.f32 %v325_v33, %v425_v41 }
  0xfa   : > { %v915_v43 = vpop.f32.mrf.mxu0  ;;  %v482_v61 = vmax.f32 %v375_v34, %v477_v42 }
  0xfb   : > { %v921_v44 = vpop.f32.mrf.mxu1 }
  0xfc   : > { %v526_v45 = vpop.f32.mrf.mxu0 }
  0xfd   : > { %v578_v46 = vpop.f32.mrf.mxu1  ;;  %v533_v54 = vmax.f32 %v429_v50, %v526_v45 }
  0xfe   : > { %v926_v47 = vpop.f32.mrf.mxu0  ;;  %v585_v56 = vmax.f32 %v481_v52, %v578_v46 }
  0xff   : > { %v932_v48 = vpop.f32.mrf.mxu1 }
 0x100   : > { %v529_v49 = vpop.f32.mrf.mxu0 }
 0x101   : > { %v581_v51 = vpop.f32.mrf.mxu1  ;;  %v534_v0 = vmax.f32 %v430_v58, %v529_v49 }
 0x102   : > { %v927_v53 = vpop.f32.mrf.mxu0  ;;  %v586_v3 = vmax.f32 %v482_v61, %v581_v51 }
 0x103   : > { %v933_v55 = vpop.f32.mrf.mxu1 }
 0x104   : > { %v630_v57 = vpop.f32.mrf.mxu0 }
 0x105   : > { %v637_v59 = vmax.f32 %v533_v54, %v630_v57  ;;  %v682_v60 = vpop.f32.mrf.mxu1 }
 0x106   : > { %v689_v62 = vmax.f32 %v585_v56, %v682_v60  ;;  %v938_v63 = vpop.f32.mrf.mxu0 }
 0x107   : > { %v944_v2 = vpop.f32.mrf.mxu1 }
 0x108   : > { %v691_v4 = vmax.f32 %v637_v59, %v689_v62  ;;  %v633_v5 = vpop.f32.mrf.mxu0 }
 0x109   : > { %v638_v6 = vmax.f32 %v534_v0, %v633_v5  ;;  %v685_v7 = vpop.f32.mrf.mxu1 }
 0x10a   : > { %v690_v8 = vmax.f32 %v586_v3, %v685_v7  ;;  %v939_v9 = vpop.f32.mrf.mxu0  ;;  %v705_v11 = vadd.f32 %v698_v1, %v691_v4 }
 0x10b   : > { %v945_v10 = vpop.f32.mrf.mxu1 }
 0x10c   : > { %v692_v12 = vmax.f32 %v638_v6, %v690_v8  ;;  %v707_v15 = vmax.f32 %v705_v11, 0.0 }
 0x10e   : > { %v706_v14 = vadd.f32 %v703_v13, %v692_v12 }
 0x110   : > { %v708_v16 = vmax.f32 %v706_v14, 0.0  ;;  %725 = sbr.rel (!%p1060_p5) target bundleno = 285 (0x11d), region = 77 }
 0x112   : > { %v880_v17 = vpack.c.bf16 %v708_v16, %v707_v15 }
 0x114   : > { %881 = vst [vmem:[%s267_s11] sm:$0xff] %v880_v17  }
 0x11b   : > { %v744_v18 = vld [vmem:[%s267_s11] sm:$0xf]  ;;  %v746_v19 = vld [vmem:[%s267_s11 + $0x4] sm:$0xf] }
 0x11c   : > { %745 = vst [vmem:[%s727_s22] sm:$0xf] %v744_v18  ;;  %747 = vst [vmem:[%s727_s22 + $0x8] sm:$0xf] %v746_v19 }
 0x11d PF: > { %p10_p10 = scmp.ge.s32.totalorder %s1047_s16, 4   ;;  %s1152_s12 = smov %s1001_s13 }
 0x11e   : > { %s1153_s13 = smov %s1058_s19  ;;  %s1154_s14 = smov %s1047_s16 }
 0x11f   :  { %12 = sbr.rel (!%p10_p10) target bundleno = 2 (0x2), region = 156 }

// kernel: _lambda_.9
= control target key start
LH: loop header
LB: loop body
LE: loop exit
PB: predicated region body
PF: predicated region fallthrough
CT: control target
= control target key end

     0   :  { %s1751_s27 = smov 0   ;;  %s1753_s28 = smov 0   ;;  %s2028_s0 = inlined_call_operand.vmem [shape: bf16[8,32,256], index: 0, kind: input, shape index: {}]   ;;  %s2029_s1 = inlined_call_operand.vmem [shape: bf16[16,256], index: 1, kind: input, shape index: {}]   ;;  %s2030_s2 = inlined_call_operand.vmem [shape: bf16[16,32], index: 2, kind: input, shape index: {}]   ;;  %s2031_s3 = inlined_call_operand.vmem [shape: f32[16,1], index: 3, kind: input, shape index: {}]   ;;  %s2032_s4 = inlined_call_operand.vmem [shape: bf16[64,16], index: 4, kind: input, shape index: {}]   ;;  %s2033_s5 = inlined_call_operand.vmem [shape: f32[64,1], index: 5, kind: input, shape index: {}]   ;;  %s2034_s6 = inlined_call_operand.vmem [shape: bf16[16,64], index: 6, kind: input, shape index: {}]   ;;  %s2035_s7 = inlined_call_operand.vmem [shape: f32[16,1], index: 7, kind: input, shape index: {}]   ;;  %s2036_s8 = inlined_call_operand.vmem [shape: bf16[16,256], index: 8, kind: output, shape index: {}]  }
   0x1   :  { %s1755_s29 = smov 0  }
   0x2 LB: > { %s1416_s30 = sadd.s32 4294967295, %s1701_s29   ;;  %s1768_s9 = sadd.s32 1, %s1701_s29   ;;  %s1701_s29 = sphi %s1755_s29, %s2041_s29   ;;  %s1697_s28 = sphi %s1753_s28, %s2040_s28   ;;  %s1693_s27 = sphi %s1751_s27, %s2039_s27  }
   0x3   : > { %s22_s10 = ssub.s32 %s1701_s29, %s1768_s9  ;;  %s25_s11 = sadd.s32 1, %s1697_s28 }
   0x4   : > { %p23_p0 = scmp.eq.s32.totalorder %s22_s10, 0  ;;  %p32_p1 = scmp.ne.s32.totalorder %s1697_s28, %s1693_s27 }
   0x5   : > { %p33_p2 = scmp.eq.s32.totalorder %s1701_s29, 0  ;;  %p214_p3 = scmp.eq.s32.totalorder %s1416_s30, 1 }
   0x6   : > { %s1779_s12 = scalar_select %p23_p0, %s1697_s28, %s25_s11  }
   0x7   : > { %p1781_p4 = por %p33_p2, %p32_p1  ;;  %p1785_p5 = por %p214_p3, %p32_p1 }
   0x8   : > { %p1419_p6 = scmp.ge.s32.totalorder %s1701_s29, 2 }
   0xa   : > { %254 = sbr.rel (%p1419_p6) target bundleno = 45 (0x2d), region = 40 }
   0xf   : > { %257 = sbr.rel (!%p1781_p4) target bundleno = 40 (0x28), region = 44  ;;  %s259_s15 = sand.u32 (%p1781_p4), 1, %s1697_s28  }
  0x10   : > { %s1421_s16 = sshll.u32 (%p1781_p4), %s1701_s29, 2  ;;  %s1420_s17 = sshll.u32 (%p1781_p4), %s259_s15, 7 }
  0x11   : > { %s1797_s20 = scalar_lea.vmem (%p1781_p4), %s2028_s0, %s1421_s16  ;;  %s1801_s21 = scalar_lea.vmem (%p1781_p4), [#allocation2], %s1420_s17 }
  0x12   : > { %v280_v0 = vld [vmem:[%s1797_s20] sm:$0xf] (%p1781_p4)  ;;  %v282_v1 = vld [vmem:[%s1797_s20 + $0x8] sm:$0xf] (%p1781_p4)  ;;  %v284_v2 = vld [vmem:[%s1797_s20 + $0x10] sm:$0xf] (%p1781_p4) }
  0x13   : > { %281 = vst [vmem:[%s1801_s21] sm:$0xf] (%p1781_p4), %v280_v0  ;;  %283 = vst [vmem:[%s1801_s21 + $0x4] sm:$0xf] (%p1781_p4), %v282_v1  ;;  %v286_v3 = vld [vmem:[%s1797_s20 + $0x18] sm:$0xf] (%p1781_p4) }
  0x14   : > { %v288_v4 = vld [vmem:[%s1797_s20 + $0x20] sm:$0xf]  ;;  %285 = vst [vmem:[%s1801_s21 + $0x8] sm:$0xf] %v284_v2  ;;  %287 = vst [vmem:[%s1801_s21 + $0xc] sm:$0xf] %v286_v3 }
  0x15   : > { %289 = vst [vmem:[%s1801_s21 + $0x10] sm:$0xf] %v288_v4  ;;  %v290_v5 = vld [vmem:[%s1797_s20 + $0x28] sm:$0xf]  ;;  %v292_v6 = vld [vmem:[%s1797_s20 + $0x30] sm:$0xf] }
  0x16   : > { %v294_v7 = vld [vmem:[%s1797_s20 + $0x38] sm:$0xf]  ;;  %291 = vst [vmem:[%s1801_s21 + $0x14] sm:$0xf] %v290_v5  ;;  %293 = vst [vmem:[%s1801_s21 + $0x18] sm:$0xf] %v292_v6 }
  0x17   : > { %295 = vst [vmem:[%s1801_s21 + $0x1c] sm:$0xf] %v294_v7  ;;  %v296_v8 = vld [vmem:[%s1797_s20 + $0x40] sm:$0xf]  ;;  %v298_v9 = vld [vmem:[%s1797_s20 + $0x48] sm:$0xf] }
  0x18   : > { %v300_v10 = vld [vmem:[%s1797_s20 + $0x50] sm:$0xf]  ;;  %297 = vst [vmem:[%s1801_s21 + $0x20] sm:$0xf] %v296_v8  ;;  %299 = vst [vmem:[%s1801_s21 + $0x24] sm:$0xf] %v298_v9 }
  0x19   : > { %301 = vst [vmem:[%s1801_s21 + $0x28] sm:$0xf] %v300_v10  ;;  %v302_v11 = vld [vmem:[%s1797_s20 + $0x58] sm:$0xf]  ;;  %v304_v12 = vld [vmem:[%s1797_s20 + $0x60] sm:$0xf] }
  0x1a   : > { %v306_v13 = vld [vmem:[%s1797_s20 + $0x68] sm:$0xf]  ;;  %303 = vst [vmem:[%s1801_s21 + $0x2c] sm:$0xf] %v302_v11  ;;  %305 = vst [vmem:[%s1801_s21 + $0x30] sm:$0xf] %v304_v12 }
  0x1b   : > { %307 = vst [vmem:[%s1801_s21 + $0x34] sm:$0xf] %v306_v13  ;;  %v308_v14 = vld [vmem:[%s1797_s20 + $0x70] sm:$0xf]  ;;  %v310_v15 = vld [vmem:[%s1797_s20 + $0x78] sm:$0xf] }
  0x1c   : > { %v312_v16 = vld [vmem:[%s1797_s20 + $0x80] sm:$0xf]  ;;  %309 = vst [vmem:[%s1801_s21 + $0x38] sm:$0xf] %v308_v14  ;;  %311 = vst [vmem:[%s1801_s21 + $0x3c] sm:$0xf] %v310_v15 }
  0x1d   : > { %313 = vst [vmem:[%s1801_s21 + $0x40] sm:$0xf] %v312_v16  ;;  %v314_v17 = vld [vmem:[%s1797_s20 + $0x88] sm:$0xf]  ;;  %v316_v18 = vld [vmem:[%s1797_s20 + $0x90] sm:$0xf] }
  0x1e   : > { %v318_v19 = vld [vmem:[%s1797_s20 + $0x98] sm:$0xf]  ;;  %315 = vst [vmem:[%s1801_s21 + $0x44] sm:$0xf] %v314_v17  ;;  %317 = vst [vmem:[%s1801_s21 + $0x48] sm:$0xf] %v316_v18 }
  0x1f   : > { %319 = vst [vmem:[%s1801_s21 + $0x4c] sm:$0xf] %v318_v19  ;;  %v320_v20 = vld [vmem:[%s1797_s20 + $0xa0] sm:$0xf]  ;;  %v322_v21 = vld [vmem:[%s1797_s20 + $0xa8] sm:$0xf] }
  0x20   : > { %v324_v22 = vld [vmem:[%s1797_s20 + $0xb0] sm:$0xf]  ;;  %321 = vst [vmem:[%s1801_s21 + $0x50] sm:$0xf] %v320_v20  ;;  %323 = vst [vmem:[%s1801_s21 + $0x54] sm:$0xf] %v322_v21 }
  0x21   : > { %325 = vst [vmem:[%s1801_s21 + $0x58] sm:$0xf] %v324_v22  ;;  %v326_v23 = vld [vmem:[%s1797_s20 + $0xb8] sm:$0xf]  ;;  %v328_v24 = vld [vmem:[%s1797_s20 + $0xc0] sm:$0xf] }
  0x22   : > { %v330_v25 = vld [vmem:[%s1797_s20 + $0xc8] sm:$0xf]  ;;  %327 = vst [vmem:[%s1801_s21 + $0x5c] sm:$0xf] %v326_v23  ;;  %329 = vst [vmem:[%s1801_s21 + $0x60] sm:$0xf] %v328_v24 }
  0x23   : > { %331 = vst [vmem:[%s1801_s21 + $0x64] sm:$0xf] %v330_v25  ;;  %v332_v26 = vld [vmem:[%s1797_s20 + $0xd0] sm:$0xf]  ;;  %v334_v27 = vld [vmem:[%s1797_s20 + $0xd8] sm:$0xf] }
  0x24   : > { %v336_v28 = vld [vmem:[%s1797_s20 + $0xe0] sm:$0xf]  ;;  %333 = vst [vmem:[%s1801_s21 + $0x68] sm:$0xf] %v332_v26  ;;  %335 = vst [vmem:[%s1801_s21 + $0x6c] sm:$0xf] %v334_v27 }
  0x25   : > { %337 = vst [vmem:[%s1801_s21 + $0x70] sm:$0xf] %v336_v28  ;;  %v338_v29 = vld [vmem:[%s1797_s20 + $0xe8] sm:$0xf]  ;;  %v340_v30 = vld [vmem:[%s1797_s20 + $0xf0] sm:$0xf] }
  0x26   : > { %v342_v31 = vld [vmem:[%s1797_s20 + $0xf8] sm:$0xf]  ;;  %339 = vst [vmem:[%s1801_s21 + $0x74] sm:$0xf] %v338_v29  ;;  %341 = vst [vmem:[%s1801_s21 + $0x78] sm:$0xf] %v340_v30 }
  0x27   : > { %343 = vst [vmem:[%s1801_s21 + $0x7c] sm:$0xf] %v342_v31 }
  0x28 PF: > { %431 = sbr.rel (!%p1781_p4) target bundleno = 45 (0x2d), region = 85  ;;  %s433_s22 = sand.u32 (%p1781_p4), 1, %s1697_s28  }
  0x29   : > { %s1423_s23 = sshll.u32 (%p1781_p4), %s1701_s29, 2  ;;  %s1422_s24 = sshll.u32 (%p1781_p4), %s433_s22, 3 }
  0x2a   : > { %s437_s10 = scalar_lea.vmem (%p1781_p4), %s2029_s1, %s1423_s23  ;;  %s435_s11 = scalar_lea.vmem (%p1781_p4), [#allocation3], %s1422_s24 }
  0x2b   : > { %v454_v32 = vld [vmem:[%s437_s10] sm:$0xf] (%p1781_p4)  ;;  %v456_v33 = vld [vmem:[%s437_s10 + $0x8] sm:$0xf] (%p1781_p4) }
  0x2c   : > { %455 = vst [vmem:[%s435_s11] sm:$0xf] (%p1781_p4), %v454_v32  ;;  %457 = vst [vmem:[%s435_s11 + $0x4] sm:$0xf] (%p1781_p4), %v456_v33 }
  0x2d PF: > { %p1424_p7 = scmp.ge.s32.totalorder %s1701_s29, 1  ;;  %p484_p8 = scmp.lt.s32.totalorder %s1701_s29, 3 }
  0x2f   : > { %p485_p9 = pnand %p1424_p7, %p484_p8 }
  0x30   : > { %s491_s13 = sand.u32 (!%p485_p9), 1, %s1693_s27  }
  0x31   : > { %488 = sbr.rel (%p485_p9) target bundleno = 742 (0x2e6), region = 126  ;;  %s1425_s15 = sshll.u32 (!%p485_p9), %s491_s13, 7 }
  0x32   : > { %s1886_s18 = scalar_lea.vmem (!%p485_p9), [#allocation2], %s1425_s15  ;;  %s1426_s25 = sshll.u32 (!%p485_p9), %s491_s13, 3 }
  0x33   : > { %s500_s26 = scalar_lea.vmem (!%p485_p9), [#allocation3], %s1426_s25  ;;  %s533_s10 = scalar_lea.vmem (!%p485_p9), [#allocation4], %s1426_s25 }
  0x36   : > { %v1703_v34 = vmov 0.0   ;;  %v1023_v35 = vld [vmem:[%s2031_s3] sm:$0xff]  ;;  %vm1704_vm0 = vmmov 0   ;;  %v1657_v36 = vld [vmem:[%s1886_s18 + $0x8] sm:$0xff]   ;;  %v1705_v37 = vmov 0   ;;  %v1658_v39 = vld [vmem:[%s1886_s18 + $0x18] sm:$0xff]  }
  0x37   : > { %1542 = vmatprep.subr.bf16.mxu0 %v1703_v34  ;;  %1550 = vmatprep.subr.bf16.mxu1 %v1703_v34  ;;  %v1024_v38 = vld [vmem:[%s2031_s3 + $0x8] sm:$0xff]  ;;  %v1659_v40 = vld [vmem:[%s1886_s18] sm:$0xff]   ;;  %v1660_v41 = vld [vmem:[%s1886_s18 + $0x10] sm:$0xff]   ;;  %vm558_vm1 = vcmask 261120   ;;  %vm1116_vm2 = vcmask 130048   ;;  %vm1225_vm3 = vcmask 523264  }
  0x38   : > { %1546 = vmatprep.mubr.msk.bf16.mxu0 %vm1704_vm0, %v1703_v34  ;;  %1554 = vmatprep.mubr.msk.bf16.mxu1 %vm1704_vm0, %v1703_v34  ;;  %v1900_v42 = vld [vmem:[%s2030_s2] sm:$0xff]   ;;  %v1662_v44 = vld [vmem:[%s1886_s18 + $0x28] sm:$0xff]   ;;  %v1663_v45 = vld [vmem:[%s1886_s18 + $0x38] sm:$0xff]   ;;  %s1494_s27 = sshll.u32 (%p1785_p5), %s1416_s30, 2 }
  0x39   : > { %1655 = vset.pattern.permute.xlu0 %v1705_v37  ;;  %1656 = vset.pattern.permute.xlu1 %v1705_v37  ;;  %v1052_v43 = vld [vmem:[%s2033_s5 + $0x20] sm:$0xff]  ;;  %v1050_v46 = vld [vmem:[%s2033_s5 + $0x10] sm:$0xff]  ;;  %v1666_v49 = vld [vmem:[%s1886_s18 + $0x48] sm:$0xff]   ;;  %s1296_s15 = scalar_lea.vmem (%p1785_p5), %s2036_s8, %s1494_s27 }
  0x3a   : > { %1027 = vperm.xlu0 %1655, %v1023_v35   ;;  %1543 = vmatpush3.bf16.msra.mxu0 %v1657_v36  ;;  %v1664_v47 = vld [vmem:[%s1886_s18 + $0x20] sm:$0xff]   ;;  %v1665_v48 = vld [vmem:[%s1886_s18 + $0x30] sm:$0xff]   ;;  %v1667_v50 = vld [vmem:[%s1886_s18 + $0x58] sm:$0xff]  }
  0x3b   : > { %1551 = vmatpush3.bf16.msra.mxu1 %v1658_v39  ;;  %1544 = vmatprep.subr.bf16.mxu0 %v1703_v34  ;;  %v1668_v51 = vld [vmem:[%s1886_s18 + $0x40] sm:$0xff]   ;;  %v1669_v54 = vld [vmem:[%s1886_s18 + $0x50] sm:$0xff]   ;;  %v1670_v55 = vld [vmem:[%s1886_s18 + $0x68] sm:$0xff]  }
  0x3c   : > { %1552 = vmatprep.subr.bf16.mxu1 %v1703_v34  ;;  %v1048_v52 = vld [vmem:[%s2033_s5] sm:$0xff]  ;;  %v1671_v56 = vld [vmem:[%s1886_s18 + $0x78] sm:$0xff]   ;;  %v1673_v58 = vld [vmem:[%s1886_s18 + $0x70] sm:$0xff]  }
  0x3d   : > { %v1208_v53 = vld [vmem:[%s2035_s7] sm:$0xff]  ;;  %v1054_v60 = vld [vmem:[%s2033_s5 + $0x30] sm:$0xff]  ;;  %v1055_v61 = vld [vmem:[%s2033_s5 + $0x38] sm:$0xff] }
  0x3e   : > { %1032 = vperm.xlu0 %1655, %v1024_v38   ;;  %1545 = vmatpush3.bf16.msra.mxu0 %v1659_v40  ;;  %v1672_v57 = vld [vmem:[%s1886_s18 + $0x60] sm:$0xff]   ;;  %v1053_v62 = vld [vmem:[%s2033_s5 + $0x28] sm:$0xff]  ;;  %v1051_v63 = vld [vmem:[%s2033_s5 + $0x18] sm:$0xff] }
  0x3f   : > { %1553 = vmatpush3.bf16.msra.mxu1 %v1660_v41  ;;  %1558 = vmatprep.subr.bf16.mxu0 %v1703_v34  ;;  %v1674_v59 = vld [vmem:[%s2032_s4] sm:$0xff]   ;;  %v1049_v0 = vld [vmem:[%s2033_s5 + $0x8] sm:$0xff] }
  0x40   : > { %1566 = vmatprep.subr.bf16.mxu1 %v1703_v34  ;;  %1088 = vperm.xlu1 %1656, %v1054_v60   ;;  %v1209_v1 = vld [vmem:[%s2035_s7 + $0x8] sm:$0xff] }
  0x41   : > { %1547 = vmatmul.mubr.msk.bf16.vlgmr.msra.gmra.mxu0 %vm558_vm1, %v1900_v42 }
  0x42   : > { %1078 = vperm.xlu0 %1655, %v1052_v43   ;;  %1555 = vmatmul.mubr.msk.bf16.vlgmr.msra.gmra.mxu1 %vm558_vm1, %v1900_v42 }
  0x43   : > { %1559 = vmatpush3.bf16.msra.mxu0 %v1662_v44  ;;  %1567 = vmatpush3.bf16.msra.mxu1 %v1663_v45 }
  0x44   : > { %1560 = vmatprep.subr.bf16.mxu0 %v1703_v34  ;;  %1568 = vmatprep.subr.bf16.mxu1 %v1703_v34 }
  0x45   : > { %1562 = vmatprep.mubr.msk.bf16.mxu0 %vm1704_vm0, %v1703_v34  ;;  %1570 = vmatprep.mubr.msk.bf16.mxu1 %vm1704_vm0, %v1703_v34 }
  0x46   : > { %1068 = vperm.xlu0 %1655, %v1050_v46   ;;  %1093 = vperm.xlu1 %1656, %v1055_v61  }
  0x47   : > { %1561 = vmatpush3.bf16.msra.mxu0 %v1664_v47  ;;  %1569 = vmatpush3.bf16.msra.mxu1 %v1665_v48 }
  0x48   : > { %1574 = vmatprep.subr.bf16.mxu0 %v1703_v34  ;;  %1582 = vmatprep.subr.bf16.mxu1 %v1703_v34 }
  0x4a   : > { %1563 = vmatmul.mubr.msk.bf16.vlgmr.msra.gmra.mxu0 %vm558_vm1, %v1900_v42  ;;  %1058 = vperm.xlu0 %1655, %v1048_v52  }
  0x4b   : > { %1571 = vmatmul.mubr.msk.bf16.vlgmr.msra.gmra.mxu1 %vm558_vm1, %v1900_v42  ;;  %1575 = vmatpush3.bf16.msra.mxu0 %v1666_v49 }
  0x4c   : > { %1583 = vmatpush3.bf16.msra.mxu1 %v1667_v50  ;;  %1576 = vmatprep.subr.bf16.mxu0 %v1703_v34 }
  0x4d   : > { %1584 = vmatprep.subr.bf16.mxu1 %v1703_v34  ;;  %1578 = vmatprep.mubr.msk.bf16.mxu0 %vm1704_vm0, %v1703_v34 }
  0x4e   : > { %1586 = vmatprep.mubr.msk.bf16.mxu1 %vm1704_vm0, %v1703_v34  ;;  %1212 = vperm.xlu0 %1655, %v1208_v53  }
  0x4f   : > { %1577 = vmatpush3.bf16.msra.mxu0 %v1668_v51  ;;  %1083 = vperm.xlu1 %1656, %v1053_v62  }
  0x50   : > { %1585 = vmatpush3.bf16.msra.mxu1 %v1669_v54  ;;  %1590 = vmatprep.subr.bf16.mxu0 %v1703_v34 }
  0x51   : > { %1598 = vmatprep.subr.bf16.mxu1 %v1703_v34 }
  0x52   : > { %1579 = vmatmul.mubr.msk.bf16.vlgmr.msra.gmra.mxu0 %vm558_vm1, %v1900_v42 }
  0x53   : > { %1587 = vmatmul.mubr.msk.bf16.vlgmr.msra.gmra.mxu1 %vm558_vm1, %v1900_v42  ;;  %1591 = vmatpush3.bf16.msra.mxu0 %v1670_v55 }
  0x54   : > { %1599 = vmatpush3.bf16.msra.mxu1 %v1671_v56  ;;  %1592 = vmatprep.subr.bf16.mxu0 %v1703_v34  ;;  %v1675_v56 = vld [vmem:[%s2032_s4 + $0x8] sm:$0xff]  }
  0x55   : > { %1600 = vmatprep.subr.bf16.mxu1 %v1703_v34  ;;  %1594 = vmatprep.mubr.msk.bf16.mxu0 %vm1704_vm0, %v1703_v34 }
  0x56   : > { %1602 = vmatprep.mubr.msk.bf16.mxu1 %vm1704_vm0, %v1703_v34  ;;  %1073 = vperm.xlu1 %1656, %v1051_v63  }
  0x57   : > { %1593 = vmatpush3.bf16.msra.mxu0 %v1672_v57  ;;  %v1676_v57 = vld [vmem:[%s2032_s4 + $0x10] sm:$0xff]  }
  0x58   : > { %1601 = vmatpush3.bf16.msra.mxu1 %v1673_v58  ;;  %v1677_v58 = vld [vmem:[%s2032_s4 + $0x18] sm:$0xff]  }
  0x59   : > { %1616 = vmatprep.subr.bf16.mxu1 %v1703_v34 }
  0x5a   : > { %1595 = vmatmul.mubr.msk.bf16.vlgmr.msra.gmra.mxu0 %vm558_vm1, %v1900_v42  ;;  %1063 = vperm.xlu1 %1656, %v1049_v0  }
  0x5b   : > { %1603 = vmatmul.mubr.msk.bf16.vlgmr.msra.gmra.mxu1 %vm558_vm1, %v1900_v42  ;;  %1608 = vmatprep.mubr.msk.bf16.mxu0 %vm1116_vm2, %v1674_v59 }
  0x5c   : > { %1624 = vmatprep.mubr.msk.bf16.mxu1 %vm1704_vm0, %v1703_v34 }
  0x5e   : > { %1217 = vperm.xlu1 %1656, %v1209_v1  }
  0xb5   : > { %v1028_v38 = vpop.permute.xlu0 %1027 }
  0xb9   : > { %v1033_v51 = vpop.permute.xlu0 %1032 }
  0xbb   : > { %v1089_v59 = vpop.permute.xlu1 %1088 }
  0xc1   : > { %v1094_v61 = vpop.permute.xlu1 %1093 }
  0xca   : > { %v1084_v1 = vpop.permute.xlu1 %1083 }
 0x101   : > { %v596_v2 = vpop.f32.mrf.mxu0 }
 0x102   : > { %v654_v3 = vpop.f32.mrf.mxu1 }
 0x103   : > { %v1548_v4 = vpop.f32.mrf.mxu0 }
 0x104   : > { %v1556_v5 = vpop.f32.mrf.mxu1 }
 0x105   : > { %v599_v6 = vpop.f32.mrf.mxu0 }
 0x106   : > { %v657_v7 = vpop.f32.mrf.mxu1 }
 0x107   : > { %v1549_v8 = vpop.f32.mrf.mxu0 }
 0x108   : > { %v1557_v9 = vpop.f32.mrf.mxu1  ;;  %v1074_v8 = vpop.permute.xlu1 %1073 }
 0x10a   : > { %v712_v10 = vpop.f32.mrf.mxu0 }
 0x10b   : > { %v772_v11 = vpop.f32.mrf.mxu1  ;;  %v719_v23 = vmax.f32 %v596_v2, %v712_v10 }
 0x10c   : > { %v1564_v12 = vpop.f32.mrf.mxu0  ;;  %v779_v25 = vmax.f32 %v654_v3, %v772_v11  ;;  %v1079_v3 = vpop.permute.xlu0 %1078 }
 0x10d   : > { %v1572_v13 = vpop.f32.mrf.mxu1 }
 0x10e   : > { %v715_v14 = vpop.f32.mrf.mxu0 }
 0x10f   : > { %v775_v15 = vpop.f32.mrf.mxu1  ;;  %v720_v31 = vmax.f32 %v599_v6, %v715_v14 }
 0x110   : > { %v1565_v16 = vpop.f32.mrf.mxu0  ;;  %v780_v35 = vmax.f32 %v657_v7, %v775_v15  ;;  %v1069_v14 = vpop.permute.xlu0 %1068 }
 0x111   : > { %v1573_v17 = vpop.f32.mrf.mxu1 }
 0x112   : > { %v832_v18 = vpop.f32.mrf.mxu0 }
 0x113   : > { %v892_v19 = vpop.f32.mrf.mxu1  ;;  %v839_v27 = vmax.f32 %v719_v23, %v832_v18 }
 0x114   : > { %v1580_v20 = vpop.f32.mrf.mxu0  ;;  %v899_v29 = vmax.f32 %v779_v25, %v892_v19 }
 0x115   : > { %v1588_v21 = vpop.f32.mrf.mxu1  ;;  %v1064_v20 = vpop.permute.xlu1 %1063 }
 0x116   : > { %v835_v22 = vpop.f32.mrf.mxu0 }
 0x117   : > { %v895_v24 = vpop.f32.mrf.mxu1  ;;  %v840_v39 = vmax.f32 %v720_v31, %v835_v22  ;;  %v1678_v31 = vld [vmem:[%s2034_s6] sm:$0xff]  }
 0x118   : > { %v1581_v26 = vpop.f32.mrf.mxu0  ;;  %v900_v41 = vmax.f32 %v780_v35, %v895_v24  ;;  %v1059_v24 = vpop.permute.xlu0 %1058 }
 0x119   : > { %v1589_v28 = vpop.f32.mrf.mxu1 }
 0x11a   : > { %v952_v30 = vpop.f32.mrf.mxu0 }
 0x11b   : > { %v959_v32 = vmax.f32 %v839_v27, %v952_v30  ;;  %v1012_v33 = vpop.f32.mrf.mxu1 }
 0x11c   : > { %v1019_v36 = vmax.f32 %v899_v29, %v1012_v33  ;;  %v1596_v37 = vpop.f32.mrf.mxu0  ;;  %v1213_v33 = vpop.permute.xlu0 %1212 }
 0x11d   : > { %v1604_v40 = vpop.f32.mrf.mxu1 }
 0x11e   : > { %v1021_v42 = vmax.f32 %v959_v32, %v1019_v36  ;;  %v955_v43 = vpop.f32.mrf.mxu0  ;;  %v1500_v32 = vld [vmem:[%s500_s26] sm:$0xff]   ;;  %v1218_v40 = vpop.permute.xlu1 %1217 }
 0x11f   : > { %v960_v44 = vmax.f32 %v840_v39, %v955_v43  ;;  %v1015_v45 = vpop.f32.mrf.mxu1  ;;  %v1501_v37 = vunpack.c.l.bf16 %v1500_v32  ;;  %v1502_v39 = vunpack.c.h.bf16 %v1500_v32 }
 0x120   : > { %v1020_v46 = vmax.f32 %v900_v41, %v1015_v45  ;;  %v1597_v47 = vpop.f32.mrf.mxu0  ;;  %v1035_v49 = vadd.f32 %v1028_v38, %v1021_v42 }
 0x121   : > { %v1605_v48 = vpop.f32.mrf.mxu1 }
 0x122   : > { %v1022_v50 = vmax.f32 %v960_v44, %v1020_v46  ;;  %v1037_v53 = vmax.f32 %v1035_v49, 0.0 }
 0x124   : > { %v1036_v52 = vadd.f32 %v1033_v51, %v1022_v50 }
 0x126   : > { %v1038_v54 = vmax.f32 %v1036_v52, 0.0 }
 0x128   : > { %v1047_v55 = vpack.c.bf16 %v1038_v54, %v1037_v53 }
 0x12a   : > { %1606 = vmatprep.subr.bf16.mxu0 %v1047_v55 }
 0x12b   : > { %1607 = vmatpush3.bf16.msra.mxu0 %v1047_v55 }
 0x12e   : > { %1609 = vmatmul.mubr.msk.bf16.vlgmr.msra.gmra.mxu0 %vm1116_vm2, %v1675_v56 }
 0x12f   : > { %1612 = vmatprep.mubr.msk.bf16.mxu0 %vm1116_vm2, %v1676_v57 }
 0x136   : > { %1613 = vmatmul.mubr.msk.bf16.gmra.mxu0 %vm1116_vm2, %v1677_v58 }
 0x1ee   : > { %v1610_v60 = vpop.f32.mrf.mxu0 }
 0x1ef   : > { %v1172_v18 = vadd.f32 %v1610_v60, %v1069_v14 }
 0x1f0   : > { %v1163_v62 = vpop.f32.mrf.mxu0 }
 0x1f1   : > { %v1196_v25 = vmax.f32 %v1172_v18, 0.0  ;;  %v1164_v26 = vadd.f32 %v1163_v62, %v1059_v24 }
 0x1f2   : > { %v1611_v63 = vpop.f32.mrf.mxu0 }
 0x1f3   : > { %v1175_v15 = vadd.f32 %v1611_v63, %v1074_v8  ;;  %v1194_v29 = vmax.f32 %v1164_v26, 0.0 }
 0x1f4   : > { %v1166_v0 = vpop.f32.mrf.mxu0 }
 0x1f5   : > { %v1197_v21 = vmax.f32 %v1175_v15, 0.0  ;;  %v1167_v22 = vadd.f32 %v1166_v0, %v1064_v20 }
 0x1f6   : > { %v1614_v2 = vpop.f32.mrf.mxu0 }
 0x1f7   : > { %v1188_v5 = vadd.f32 %v1614_v2, %v1089_v59  ;;  %v1205_v27 = vpack.c.bf16 %v1197_v21, %v1196_v25  ;;  %v1195_v28 = vmax.f32 %v1167_v22, 0.0 }
 0x1f8   : > { %v1179_v4 = vpop.f32.mrf.mxu0 }
 0x1f9   : > { %v1200_v10 = vmax.f32 %v1188_v5, 0.0  ;;  %v1180_v11 = vadd.f32 %v1179_v4, %v1079_v3  ;;  %v1204_v30 = vpack.c.bf16 %v1195_v28, %v1194_v29 }
 0x1fa   : > { %v1615_v6 = vpop.f32.mrf.mxu0 }
 0x1fb   : > { %v1191_v7 = vadd.f32 %v1615_v6, %v1094_v61  ;;  %v1198_v19 = vmax.f32 %v1180_v11, 0.0 }
 0x1fc   : > { %v1182_v9 = vpop.f32.mrf.mxu0 }
 0x1fd   : > { %v1201_v12 = vmax.f32 %v1191_v7, 0.0  ;;  %v1183_v13 = vadd.f32 %v1182_v9, %v1084_v1 }
 0x1ff   : > { %v1207_v16 = vpack.c.bf16 %v1201_v12, %v1200_v10  ;;  %v1199_v17 = vmax.f32 %v1183_v13, 0.0 }
 0x201   : > { %1617 = vmatpush3.bf16.msra.mxu1 %v1207_v16  ;;  %v1206_v23 = vpack.c.bf16 %v1199_v17, %v1198_v19 }
 0x202   : > { %1618 = vmatprep.subr.bf16.mxu1 %v1703_v34 }
 0x205   : > { %1619 = vmatpush3.bf16.msra.mxu1 %v1206_v23 }
 0x206   : > { %1620 = vmatprep.subr.bf16.mxu1 %v1703_v34 }
 0x209   : > { %1621 = vmatpush3.bf16.msra.mxu1 %v1205_v27 }
 0x20a   : > { %1622 = vmatprep.subr.bf16.mxu1 %v1703_v34 }
 0x20d   : > { %1623 = vmatpush3.bf16.msra.mxu1 %v1204_v30 }
 0x210   : > { %1625 = vmatmul.mubr.msk.bf16.vlgmr.msra.gmra.mxu1 %vm1225_vm3, %v1678_v31 }
 0x2d0   : > { %v1263_v35 = vpop.f32.mrf.mxu1 }
 0x2d1   : > { %v1264_v36 = vadd.f32 %v1263_v35, %v1213_v33 }
 0x2d2   : > { %v1626_v38 = vpop.f32.mrf.mxu1 }
 0x2d3   : > { %v1274_v41 = vadd.f32 %v1501_v37, %v1264_v36 }
 0x2d4   : > { %v1266_v34 = vpop.f32.mrf.mxu1 }
 0x2d5   : > { %v1267_v42 = vadd.f32 %v1266_v34, %v1218_v40  ;;  %v1276_v45 = vmax.f32 %v1274_v41, 0.0 }
 0x2d6   : > { %v1627_v43 = vpop.f32.mrf.mxu1 }
 0x2d7   : > { %v1275_v44 = vadd.f32 %v1502_v39, %v1267_v42 }
 0x2d9   : > { %v1277_v46 = vmax.f32 %v1275_v44, 0.0  ;;  %1294 = sbr.rel (!%p1785_p5) target bundleno = 742 (0x2e6), region = 138 }
 0x2db   : > { %v1506_v47 = vpack.c.bf16 %v1277_v46, %v1276_v45 }
 0x2dd   : > { %1507 = vst [vmem:[%s533_s10] sm:$0xff] %v1506_v47  }
 0x2e4   : > { %v1313_v48 = vld [vmem:[%s533_s10] sm:$0xf]  ;;  %v1315_v49 = vld [vmem:[%s533_s10 + $0x4] sm:$0xf] }
 0x2e5   : > { %1314 = vst [vmem:[%s1296_s15] sm:$0xf] %v1313_v48  ;;  %1316 = vst [vmem:[%s1296_s15 + $0x8] sm:$0xf] %v1315_v49 }
 0x2e6 PF: > { %p15_p10 = scmp.ge.s32.totalorder %s1768_s9, 4   ;;  %s2039_s27 = smov %s1697_s28 }
 0x2e7   : > { %s2040_s28 = smov %s1779_s12  ;;  %s2041_s29 = smov %s1768_s9 }
 0x2e8   :  { %17 = sbr.rel (!%p15_p10) target bundleno = 2 (0x2), region = 225 }

// kernel: _lambda_.10
= control target key start
LH: loop header
LB: loop body
LE: loop exit
PB: predicated region body
PF: predicated region fallthrough
CT: control target
= control target key end

     0   :  { %s765_s18 = smov 0   ;;  %s767_s19 = smov 0   ;;  %s854_s0 = inlined_call_operand.vmem [shape: bf16[16,256], index: 0, kind: input, shape index: {}]   ;;  %s855_s1 = inlined_call_operand.vmem [shape: bf16[32,256], index: 1, kind: input, shape index: {}]   ;;  %s856_s2 = inlined_call_operand.vmem [shape: bf16[16,16], index: 2, kind: input, shape index: {}]   ;;  %s857_s3 = inlined_call_operand.vmem [shape: bf16[16,32], index: 3, kind: input, shape index: {}]   ;;  %s858_s4 = inlined_call_operand.vmem [shape: f32[16,1], index: 4, kind: input, shape index: {}]   ;;  %s859_s5 = inlined_call_operand.vmem [shape: bf16[16,256], index: 5, kind: output, shape index: {}]  }
   0x1   :  { %s769_s20 = smov 0  }
   0x2 LB: > { %s624_s21 = sadd.s32 4294967295, %s730_s20   ;;  %s782_s22 = sadd.s32 1, %s730_s20   ;;  %s730_s20 = sphi %s769_s20, %s864_s20   ;;  %s726_s19 = sphi %s767_s19, %s863_s19   ;;  %s722_s18 = sphi %s765_s18, %s862_s18  }
   0x3   : > { %s19_s23 = ssub.s32 %s730_s20, %s782_s22  ;;  %s22_s24 = sadd.s32 1, %s726_s19 }
   0x4   : > { %p20_p0 = scmp.eq.s32.totalorder %s19_s23, 0  ;;  %p29_p1 = scmp.ne.s32.totalorder %s726_s19, %s722_s18 }
   0x5   : > { %p30_p2 = scmp.eq.s32.totalorder %s730_s20, 0  ;;  %p148_p3 = scmp.eq.s32.totalorder %s624_s21, 1 }
   0x6   : > { %s793_s25 = scalar_select %p20_p0, %s726_s19, %s22_s24  }
   0x7   : > { %p795_p4 = por %p30_p2, %p29_p1  ;;  %p799_p5 = por %p148_p3, %p29_p1 }
   0x8   : > { %p627_p6 = scmp.ge.s32.totalorder %s730_s20, 2 }
   0xa   : > { %179 = sbr.rel (%p627_p6) target bundleno = 26 (0x1a), region = 28 }
   0xf   : > { %182 = sbr.rel (!%p795_p4) target bundleno = 20 (0x14), region = 32  ;;  %s184_s28 = sand.u32 (%p795_p4), 1, %s726_s19  }
  0x10   : > { %s629_s29 = sshll.u32 (%p795_p4), %s730_s20, 2  ;;  %s628_s30 = sshll.u32 (%p795_p4), %s184_s28, 3 }
  0x11   : > { %s188_s8 = scalar_lea.vmem (%p795_p4), %s854_s0, %s629_s29  ;;  %s186_s9 = scalar_lea.vmem (%p795_p4), [#allocation2], %s628_s30 }
  0x12   : > { %v205_v0 = vld [vmem:[%s188_s8] sm:$0xf] (%p795_p4)  ;;  %v207_v1 = vld [vmem:[%s188_s8 + $0x8] sm:$0xf] (%p795_p4) }
  0x13   : > { %206 = vst [vmem:[%s186_s9] sm:$0xf] (%p795_p4), %v205_v0  ;;  %208 = vst [vmem:[%s186_s9 + $0x4] sm:$0xf] (%p795_p4), %v207_v1 }
  0x14 PF: > { %236 = sbr.rel (!%p795_p4) target bundleno = 26 (0x1a), region = 73  ;;  %s238_s10 = sand.u32 (%p795_p4), 1, %s726_s19  }
  0x15   : > { %s631_s11 = sshll.u32 (%p795_p4), %s730_s20, 2  ;;  %s630_s12 = sshll.u32 (%p795_p4), %s238_s10, 4 }
  0x16   : > { %s242_s15 = scalar_lea.vmem (%p795_p4), %s855_s1, %s631_s11  ;;  %s240_s16 = scalar_lea.vmem (%p795_p4), [#allocation3], %s630_s12 }
  0x17   : > { %v259_v2 = vld [vmem:[%s242_s15] sm:$0xf] (%p795_p4)  ;;  %v261_v3 = vld [vmem:[%s242_s15 + $0x8] sm:$0xf] (%p795_p4)  ;;  %v263_v4 = vld [vmem:[%s242_s15 + $0x10] sm:$0xf] (%p795_p4) }
  0x18   : > { %260 = vst [vmem:[%s240_s16] sm:$0xf] (%p795_p4), %v259_v2  ;;  %262 = vst [vmem:[%s240_s16 + $0x4] sm:$0xf] (%p795_p4), %v261_v3  ;;  %v265_v5 = vld [vmem:[%s242_s15 + $0x18] sm:$0xf] (%p795_p4) }
  0x19   : > { %264 = vst [vmem:[%s240_s16 + $0x8] sm:$0xf] %v263_v4  ;;  %266 = vst [vmem:[%s240_s16 + $0xc] sm:$0xf] %v265_v5 }
  0x1a PF: > { %p632_p7 = scmp.ge.s32.totalorder %s730_s20, 1  ;;  %p297_p8 = scmp.lt.s32.totalorder %s730_s20, 3 }
  0x1c   : > { %p298_p9 = pnand %p632_p7, %p297_p8 }
  0x1d   : > { %s304_s17 = sand.u32 (!%p298_p9), 1, %s722_s18  }
  0x1e   : > { %301 = sbr.rel (%p298_p9) target bundleno = 259 (0x103), region = 114  ;;  %s634_s23 = sshll.u32 (!%p298_p9), %s304_s17, 4 }
  0x1f   : > { %s821_s24 = sshll.u32 (!%p298_p9), %s304_s17, 3  ;;  %s313_s26 = scalar_lea.vmem (!%p298_p9), [#allocation3], %s634_s23 }
  0x20   : > { %s306_s30 = scalar_lea.vmem (!%p298_p9), [#allocation2], %s821_s24  ;;  %s340_s11 = scalar_lea.vmem (!%p298_p9), [#allocation4], %s821_s24 }
  0x23   : > { %v732_v6 = vmov 0.0   ;;  %vm733_vm0 = vmmov 0   ;;  %v703_v7 = vld [vmem:[%s313_s26 + $0x8] sm:$0xff]   ;;  %v705_v8 = vld [vmem:[%s856_s2] sm:$0xff]   ;;  %vm425_vm1 = vcmask 130048   ;;  %v734_v12 = vmov 0  }
  0x24   : > { %661 = vmatprep.subr.bf16.mxu0 %v732_v6  ;;  %669 = vmatprep.subr.bf16.mxu1 %v732_v6  ;;  %v704_v9 = vld [vmem:[%s306_s30] sm:$0xff]   ;;  %v706_v10 = vld [vmem:[%s313_s26] sm:$0xff]   ;;  %vm369_vm2 = vcmask 261120   ;;  %s646_s12 = sshll.u32 (%p799_p5), %s624_s21, 2 }
  0x25   : > { %671 = vmatprep.mubr.msk.bf16.mxu1 %vm733_vm0, %v732_v6  ;;  %665 = vmatprep.mubr.msk.bf16.mxu0 %vm733_vm0, %v732_v6  ;;  %v470_v11 = vld [vmem:[%s858_s4] sm:$0xff]  ;;  %v471_v14 = vld [vmem:[%s858_s4 + $0x8] sm:$0xff]  ;;  %s504_s15 = scalar_lea.vmem (%p799_p5), %s859_s5, %s646_s12 }
  0x26   : > { %662 = vmatpush3.bf16.msra.mxu0 %v703_v7  ;;  %670 = vmatpush3.bf16.msra.mxu1 %v704_v9  ;;  %v707_v13 = vld [vmem:[%s857_s3] sm:$0xff]  }
  0x27   : > { %663 = vmatprep.subr.bf16.mxu0 %v732_v6  ;;  %702 = vset.pattern.permute.xlu0 %v734_v12 }
  0x28   : > { %474 = vperm.xlu0 %702, %v470_v11  }
  0x29   : > { %672 = vmatmul.mubr.msk.bf16.vlgmr.msra.gmra.mxu1 %vm425_vm1, %v705_v8 }
  0x2a   : > { %664 = vmatpush3.bf16.msra.mxu0 %v706_v10 }
  0x2c   : > { %479 = vperm.xlu0 %702, %v471_v14  }
  0x2d   : > { %666 = vmatmul.mubr.msk.bf16.vlgmr.msra.gmra.mxu0 %vm369_vm2, %v707_v13 }
  0xa3   : > { %v475_v17 = vpop.permute.xlu0 %474 }
  0xa7   : > { %v480_v26 = vpop.permute.xlu0 %479 }
  0xe9   : > { %v463_v15 = vpop.f32.mrf.mxu1 }
  0xeb   : > { %v673_v16 = vpop.f32.mrf.mxu1 }
  0xed   : > { %v407_v18 = vpop.f32.mrf.mxu0  ;;  %v466_v20 = vpop.f32.mrf.mxu1 }
  0xee   : > { %v464_v19 = vadd.f32 %v463_v15, %v407_v18 }
  0xef   : > { %v667_v21 = vpop.f32.mrf.mxu0  ;;  %v674_v22 = vpop.f32.mrf.mxu1 }
  0xf0   : > { %v482_v24 = vadd.f32 %v475_v17, %v464_v19 }
  0xf1   : > { %v410_v23 = vpop.f32.mrf.mxu0 }
  0xf2   : > { %v467_v25 = vadd.f32 %v466_v20, %v410_v23  ;;  %v484_v29 = vmax.f32 %v482_v24, 0.0 }
  0xf3   : > { %v668_v27 = vpop.f32.mrf.mxu0 }
  0xf4   : > { %v483_v28 = vadd.f32 %v480_v26, %v467_v25 }
  0xf6   : > { %v485_v30 = vmax.f32 %v483_v28, 0.0  ;;  %502 = sbr.rel (!%p799_p5) target bundleno = 259 (0x103), region = 126 }
  0xf8   : > { %v654_v31 = vpack.c.bf16 %v485_v30, %v484_v29 }
  0xfa   : > { %655 = vst [vmem:[%s340_s11] sm:$0xff] %v654_v31  }
 0x101   : > { %v521_v32 = vld [vmem:[%s340_s11] sm:$0xf]  ;;  %v523_v33 = vld [vmem:[%s340_s11 + $0x4] sm:$0xf] }
 0x102   : > { %522 = vst [vmem:[%s504_s15] sm:$0xf] %v521_v32  ;;  %524 = vst [vmem:[%s504_s15 + $0x8] sm:$0xf] %v523_v33 }
 0x103 PF: > { %p12_p10 = scmp.ge.s32.totalorder %s782_s22, 4   ;;  %s862_s18 = smov %s726_s19 }
 0x104   : > { %s863_s19 = smov %s793_s25  ;;  %s864_s20 = smov %s782_s22 }
 0x105   :  { %14 = sbr.rel (!%p12_p10) target bundleno = 2 (0x2), region = 206 }

// kernel: _lambda_.12
= control target key start
LH: loop header
LB: loop body
LE: loop exit
PB: predicated region body
PF: predicated region fallthrough
CT: control target
= control target key end

     0   :  { %s490_s12 = smov 0   ;;  %s492_s13 = smov 0   ;;  %s559_s0 = inlined_call_operand.vmem [shape: bf16[16,256], index: 0, kind: input, shape index: {}]   ;;  %s560_s1 = inlined_call_operand.vmem [shape: bf16[16,16], index: 1, kind: input, shape index: {}]   ;;  %s561_s2 = inlined_call_operand.vmem [shape: f32[16,1], index: 2, kind: input, shape index: {}]   ;;  %s562_s3 = inlined_call_operand.vmem [shape: f32[16,256], index: 3, kind: output, shape index: {}]  }
   0x1   :  { %s494_s14 = smov 0  }
   0x2 LB: > { %s389_s15 = sadd.s32 4294967295, %s465_s14   ;;  %s507_s16 = sadd.s32 1, %s465_s14   ;;  %s465_s14 = sphi %s494_s14, %s566_s14   ;;  %s461_s13 = sphi %s492_s13, %s565_s13   ;;  %s457_s12 = sphi %s490_s12, %s564_s12  }
   0x3   : > { %s17_s17 = ssub.s32 %s465_s14, %s507_s16  ;;  %s20_s18 = sadd.s32 1, %s461_s13 }
   0x4   : > { %p18_p0 = scmp.eq.s32.totalorder %s17_s17, 0  ;;  %p27_p1 = scmp.ne.s32.totalorder %s461_s13, %s457_s12 }
   0x5   : > { %p28_p2 = scmp.eq.s32.totalorder %s465_s14, 0  ;;  %p99_p3 = scmp.eq.s32.totalorder %s389_s15, 1 }
   0x6   : > { %s518_s19 = scalar_select %p18_p0, %s461_s13, %s20_s18  }
   0x7   : > { %p29_p4 = por %p28_p2, %p27_p1  ;;  %p520_p5 = por %p99_p3, %p27_p1 }
   0x8   : > { %p392_p6 = scmp.ge.s32.totalorder %s465_s14, 2 }
   0xa   : > { %127 = sbr.rel (%p392_p6) target bundleno = 20 (0x14), region = 24 }
   0xf   : > { %130 = sbr.rel (!%p29_p4) target bundleno = 20 (0x14), region = 28  ;;  %s132_s21 = sand.u32 (%p29_p4), 1, %s461_s13  }
  0x10   : > { %s394_s22 = sshll.u32 (%p29_p4), %s465_s14, 2  ;;  %s393_s23 = sshll.u32 (%p29_p4), %s132_s21, 3 }
  0x11   : > { %s136_s26 = scalar_lea.vmem (%p29_p4), %s559_s0, %s394_s22  ;;  %s134_s27 = scalar_lea.vmem (%p29_p4), [#allocation2], %s393_s23 }
  0x12   : > { %v153_v0 = vld [vmem:[%s136_s26] sm:$0xf] (%p29_p4)  ;;  %v155_v1 = vld [vmem:[%s136_s26 + $0x8] sm:$0xf] (%p29_p4) }
  0x13   : > { %154 = vst [vmem:[%s134_s27] sm:$0xf] (%p29_p4), %v153_v0  ;;  %156 = vst [vmem:[%s134_s27 + $0x4] sm:$0xf] (%p29_p4), %v155_v1 }
  0x14 PF: > { %p395_p7 = scmp.ge.s32.totalorder %s465_s14, 1  ;;  %p183_p8 = scmp.lt.s32.totalorder %s465_s14, 3 }
  0x16   : > { %p184_p9 = pnand %p395_p7, %p183_p8 }
  0x17   : > { %s190_s28 = sand.u32 (!%p184_p9), 1, %s457_s12  }
  0x18   : > { %187 = sbr.rel (%p184_p9) target bundleno = 242 (0xf2), region = 69  ;;  %s396_s29 = sshll.u32 (!%p184_p9), %s190_s28, 3 }
  0x19   : > { %s192_s5 = scalar_lea.vmem (!%p184_p9), [#allocation2], %s396_s29  ;;  %s397_s10 = sshll.u32 (!%p184_p9), %s190_s28, 4 }
  0x1a   : > { %s211_s11 = scalar_lea.vmem (!%p184_p9), [#allocation3], %s397_s10 }
  0x1d   : > { %v467_v2 = vmov 0.0   ;;  %vm468_vm0 = vmmov 0   ;;  %v217_v3 = vld [vmem:[%s561_s2] sm:$0xff]  ;;  %v469_v4 = vmov 0   ;;  %v218_v7 = vld [vmem:[%s561_s2 + $0x8] sm:$0xff]  ;;  %vm240_vm1 = vcmask 130048  }
  0x1e   : > { %407 = vmatprep.subr.bf16.mxu0 %v467_v2  ;;  %409 = vmatprep.mubr.msk.bf16.mxu0 %vm468_vm0, %v467_v2  ;;  %v441_v5 = vld [vmem:[%s192_s5] sm:$0xff]   ;;  %s402_s12 = sshll.u32 (%p520_p5), %s389_s15, 3 }
  0x1f   : > { %440 = vset.pattern.permute.xlu0 %v469_v4  ;;  %v442_v6 = vld [vmem:[%s560_s1] sm:$0xff]   ;;  %408 = vmatpush3.bf16.msra.mxu0 %v441_v5  ;;  %s295_s21 = scalar_lea.vmem (%p520_p5), %s562_s3, %s402_s12 }
  0x20   : > { %221 = vperm.xlu0 %440, %v217_v3  }
  0x22   : > { %410 = vmatmul.mubr.msk.bf16.vlgmr.msra.gmra.mxu0 %vm240_vm1, %v442_v6 }
  0x24   : > { %226 = vperm.xlu0 %440, %v218_v7  }
  0x9b   : > { %v222_v8 = vpop.permute.xlu0 %221 }
  0x9f   : > { %v227_v12 = vpop.permute.xlu0 %226 }
  0xe2   : > { %v278_v9 = vpop.f32.mrf.mxu0 }
  0xe3   : > { %v279_v10 = vadd.f32 %v278_v9, %v222_v8 }
  0xe4   : > { %v411_v11 = vpop.f32.mrf.mxu0 }
  0xe5   : > { %285 = vst [vmem:[%s211_s11] sm:$0xff] %v279_v10  ;;  %293 = sbr.rel (!%p520_p5) target bundleno = 242 (0xf2), region = 77 }
  0xe6   : > { %v281_v13 = vpop.f32.mrf.mxu0 }
  0xe7   : > { %v282_v14 = vadd.f32 %v281_v13, %v227_v12 }
  0xe8   : > { %v412_v15 = vpop.f32.mrf.mxu0 }
  0xe9   : > { %286 = vst [vmem:[%s211_s11 + $0x8] sm:$0xff] %v282_v14 }
  0xec   : > { %v326_v16 = vld [vmem:[%s211_s11] sm:$0xff] }
  0xed   : > { %327 = vst [vmem:[%s295_s21] sm:$0xff] %v326_v16 }
  0xf0   : > { %v328_v17 = vld [vmem:[%s211_s11 + $0x8] sm:$0xff] }
  0xf1   : > { %329 = vst [vmem:[%s295_s21 + $0x10] sm:$0xff] %v328_v17 }
  0xf2 PF: > { %p10_p10 = scmp.ge.s32.totalorder %s507_s16, 4   ;;  %s564_s12 = smov %s461_s13 }
  0xf3   : > { %s565_s13 = smov %s518_s19  ;;  %s566_s14 = smov %s507_s16 }
  0xf4   :  { %12 = sbr.rel (!%p10_p10) target bundleno = 2 (0x2), region = 146 }

// kernel: _lambda_.11
= control target key start
LH: loop header
LB: loop body
LE: loop exit
PB: predicated region body
PF: predicated region fallthrough
CT: control target
= control target key end

     0   :  { %s730_s18 = smov 0   ;;  %s732_s19 = smov 0   ;;  %s801_s0 = inlined_call_operand.vmem [shape: bf16[8,1024], index: 0, kind: input, shape index: {}]   ;;  %s802_s1 = inlined_call_operand.vmem [shape: bf16[16,1024], index: 1, kind: input, shape index: {}]   ;;  %s803_s2 = inlined_call_operand.vmem [shape: bf16[8,8], index: 2, kind: input, shape index: {}]   ;;  %s804_s3 = inlined_call_operand.vmem [shape: bf16[8,16], index: 3, kind: input, shape index: {}]   ;;  %s805_s4 = inlined_call_operand.vmem [shape: f32[8,1], index: 4, kind: input, shape index: {}]   ;;  %s806_s5 = inlined_call_operand.vmem [shape: bf16[8,1024], index: 5, kind: output, shape index: {}]  }
   0x1   :  { %s734_s20 = smov 0  }
   0x2 LB: > { %s605_s21 = sadd.s32 4294967295, %s697_s20   ;;  %s747_s22 = sadd.s32 1, %s697_s20   ;;  %s697_s20 = sphi %s734_s20, %s809_s20   ;;  %s693_s19 = sphi %s732_s19, %s808_s19   ;;  %s689_s18 = sphi %s730_s18, %s807_s18  }
   0x3   : > { %s45_s23 = ssub.s32 %s697_s20, %s747_s22  ;;  %s48_s24 = sadd.s32 1, %s693_s19 }
   0x4   : > { %p46_p0 = scmp.eq.s32.totalorder %s45_s23, 0  ;;  %p55_p1 = scmp.ne.s32.totalorder %s693_s19, %s689_s18 }
   0x5   : > { %p56_p2 = scmp.eq.s32.totalorder %s697_s20, 0  ;;  %p608_p4 = scmp.ge.s32.totalorder %s697_s20, 2 }
   0x6   : > { %s756_s25 = scalar_select %p46_p0, %s693_s19, %s48_s24  }
   0x7   : > { %p57_p3 = por %p56_p2, %p55_p1  ;;  %179 = sbr.rel (%p608_p4) target bundleno = 18 (0x12), region = 28 }
   0xc   : > { %191 = sbr.rel (!%p57_p3) target bundleno = 18 (0x12), region = 36  ;;  %s193_s26 = sand.u32 (%p57_p3), 1, %s693_s19  }
   0xd   : > { %s636_s27 = sshll.u32 (%p57_p3), %s697_s20, 4  ;;  %s609_s28 = sshll.u32 (%p57_p3), %s193_s26, 5 }
   0xe   : > { %s198_s6 = scalar_lea.vmem (%p57_p3), %s802_s1, %s636_s27  ;;  %s195_s7 = scalar_lea.vmem (%p57_p3), [#allocation2], %s609_s28 }
   0xf   : > { %v211_v0 = vld [vmem:[%s198_s6] sm:$0xff] (%p57_p3)  ;;  %v213_v1 = vld [vmem:[%s198_s6 + $0x8] sm:$0xff] (%p57_p3) }
  0x10   : > { %v215_v2 = vld [vmem:[%s198_s6 + $0x20] sm:$0xff] (%p57_p3)  ;;  %212 = vst [vmem:[%s195_s7] sm:$0xff] (%p57_p3), %v211_v0  ;;  %214 = vst [vmem:[%s195_s7 + $0x8] sm:$0xff] (%p57_p3), %v213_v1  ;;  %v217_v3 = vld [vmem:[%s198_s6 + $0x28] sm:$0xff] (%p57_p3) }
  0x11   : > { %216 = vst [vmem:[%s195_s7 + $0x10] sm:$0xff] %v215_v2  ;;  %218 = vst [vmem:[%s195_s7 + $0x18] sm:$0xff] %v217_v3 }
  0x12 PF: > { %p612_p5 = scmp.ge.s32.totalorder %s697_s20, 1  ;;  %p223_p6 = scmp.lt.s32.totalorder %s697_s20, 3 }
  0x14   : > { %p224_p7 = pnand %p612_p5, %p223_p6 }
  0x15   : > { %s230_s8 = sand.u32 (!%p224_p7), 1, %s689_s18   ;;  %s614_s9 = sshll.u32 (!%p224_p7), %s605_s21, 2 }
  0x16   : > { %227 = sbr.rel (%p224_p7) target bundleno = 246 (0xf6), region = 59  ;;  %s613_s10 = sshll.u32 (!%p224_p7), %s230_s8, 5 }
  0x17   : > { %p263_p8 = scmp.lt.s32.totalorder (!%p224_p7), %s614_s9, 7  ;;  %s232_s13 = scalar_lea.vmem (!%p224_p7), [#allocation2], %s613_s10 }
  0x1b   : > { %v699_v4 = vmov 0   ;;  %v499_v5 = vld [vmem:[%s805_s4] sm:$0xff]  ;;  %s811_s9 = smov (!%p263_p8, %s614_s9), 7  ;;  %v667_v7 = vld [vmem:[%s232_s13 + $0xc] ss:$16 sps:$4 sm:$0xff]   ;;  %vm304_vm0 = vcmask 130048  }
  0x1c   : > { %340 = vmatprep.mubr.bf16.mxu0 %v699_v4  ;;  %381 = vmatprep.mubr.bf16.mxu1 %v699_v4  ;;  %v665_v6 = vld [vmem:[%s232_s13 + $0x4] ss:$16 sps:$4 sm:$0xff]   ;;  %v669_v8 = vld [vmem:[%s232_s13] ss:$16 sps:$4 sm:$0xff]   ;;  %v670_v9 = vld [vmem:[%s232_s13 + $0x8] ss:$16 sps:$4 sm:$0xff]  }
  0x1d   : > { %664 = vset.pattern.permute.xlu0 %v699_v4  ;;  %322 = vmatprep.subr.bf16.mxu0 %v665_v6  ;;  %s615_s14 = sshll.u32 %s811_s9, 2  ;;  %v279_v10 = vld [vmem:[%s804_s3] sm:$0xf]  ;;  %vm404_vm1 = vcmask 1043456   ;;  %vm400_vm2 = vcmask 64512  }
  0x1e   : > { %502 = vperm.xlu0 %664, %v499_v5   ;;  %363 = vmatprep.subr.bf16.mxu1 %v667_v7  ;;  %s266_s17 = scalar_lea.vmem %s801_s0, %s615_s14  ;;  %v276_v19 = vld [vmem:[%s803_s2] sm:$0xf]  ;;  %s273_s27 = scalar_lea.vmem %s806_s5, %s615_s14 }
  0x1f   : > { %323 = vmatpush1.bf16.msra.mxu0 %v669_v8  ;;  %364 = vmatpush1.bf16.msra.mxu1 %v670_v9  ;;  %v277_v11 = vld [vmem:[%s266_s17] sm:$0xff]  ;;  %v278_v12 = vld [vmem:[%s266_s17 + $0x8] sm:$0xff] }
  0x20   : > { %v625_v13 = vcombine.high %v277_v11, %v277_v11  ;;  %v624_v14 = vcombine.low %v277_v11, %v277_v11  ;;  %v627_v15 = vcombine.high %v278_v12, %v278_v12  ;;  %v626_v16 = vcombine.low %v278_v12, %v278_v12 }
  0x22   : > { %622 = vmatmul.mubr.msk.bf16.vlgmr.msra.gmra.mxu0 %vm304_vm0, %v279_v10  ;;  %623 = vmatmul.mubr.msk.bf16.vlgmr.msra.gmra.mxu1 %vm304_vm0, %v279_v10  ;;  %v406_v17 = vsel %vm404_vm1, %v624_v14, 0  ;;  %v412_v18 = vsel %vm404_vm1, %v626_v16, 0 }
  0x23   : > { %628 = vmatprep.subr.msk.bf16.mxu0 %vm404_vm1, %v625_v13  ;;  %630 = vmatprep.subr.msk.bf16.mxu1 %vm404_vm1, %v627_v15 }
  0x24   : > { %432 = vmatpush1.bf16.msra.mxu0 %v406_v17  ;;  %473 = vmatpush1.bf16.msra.mxu1 %v412_v18 }
  0x25   : > { %449 = vmatprep.mubr.bf16.mxu0 %v699_v4  ;;  %490 = vmatprep.mubr.bf16.mxu1 %v699_v4 }
  0x2a   : > { %629 = vmatmul.mubr.msk.bf16.vlgmr.msra.gmra.mxu0 %vm400_vm2, %v276_v19  ;;  %631 = vmatmul.mubr.msk.bf16.vlgmr.msra.gmra.mxu1 %vm400_vm2, %v276_v19 }
  0x99   : > { %v503_v28 = vpop.permute.xlu0 %502 }
  0xe2   : > { %v342_v20 = vpop.f32.mrf.mxu0  ;;  %v383_v21 = vpop.f32.mrf.mxu1 }
  0xe4   : > { %v344_v22 = vpop.f32.mrf.mxu0  ;;  %v385_v23 = vpop.f32.mrf.mxu1 }
  0xe6   : > { %v346_v24 = vpop.f32.mrf.mxu0  ;;  %v387_v25 = vpop.f32.mrf.mxu1 }
  0xe8   : > { %v347_v26 = vpop.f32.mrf.mxu0  ;;  %v388_v27 = vpop.f32.mrf.mxu1 }
  0xea   : > { %v451_v29 = vpop.f32.mrf.mxu0  ;;  %v492_v30 = vpop.f32.mrf.mxu1 }
  0xeb   : > { %v452_v31 = vadd.f32 %v451_v29, %v342_v20  ;;  %v493_v32 = vadd.f32 %v492_v30, %v383_v21 }
  0xec   : > { %v453_v33 = vpop.f32.mrf.mxu0  ;;  %v494_v34 = vpop.f32.mrf.mxu1 }
  0xed   : > { %v505_v35 = vadd.f32 %v503_v28, %v452_v31  ;;  %v507_v36 = vadd.f32 %v503_v28, %v493_v32  ;;  %v454_v37 = vadd.f32 %v453_v33, %v344_v22  ;;  %v495_v38 = vadd.f32 %v494_v34, %v385_v23 }
  0xee   : > { %v455_v39 = vpop.f32.mrf.mxu0  ;;  %v496_v40 = vpop.f32.mrf.mxu1 }
  0xef   : > { %v506_v41 = vadd.f32 %v503_v28, %v454_v37  ;;  %v508_v42 = vadd.f32 %v503_v28, %v495_v38  ;;  %v509_v45 = vmax.f32 %v505_v35, 0.0  ;;  %v511_v46 = vmax.f32 %v507_v36, 0.0 }
  0xf0   : > { %v456_v43 = vpop.f32.mrf.mxu0  ;;  %v497_v44 = vpop.f32.mrf.mxu1 }
  0xf1   : > { %v510_v47 = vmax.f32 %v506_v41, 0.0  ;;  %v512_v48 = vmax.f32 %v508_v42, 0.0 }
  0xf3   : > { %v637_v49 = vpack.c.bf16 %v510_v47, %v509_v45  ;;  %v638_v50 = vpack.c.bf16 %v512_v48, %v511_v46 }
  0xf5   : > { %529 = vst [vmem:[%s273_s27] sm:$0xff] %v637_v49  ;;  %530 = vst [vmem:[%s273_s27 + $0x8] sm:$0xff] %v638_v50 }
  0xf6 PF: > { %p12_p9 = scmp.ge.s32.totalorder %s747_s22, 4   ;;  %s807_s18 = smov %s693_s19 }
  0xf7   : > { %s808_s19 = smov %s756_s25  ;;  %s809_s20 = smov %s747_s22 }
  0xf8   :  { %14 = sbr.rel (!%p12_p9) target bundleno = 2 (0x2), region = 101 }

// kernel: _lambda_.13
= control target key start
LH: loop header
LB: loop body
LE: loop exit
PB: predicated region body
PF: predicated region fallthrough
CT: control target
= control target key end

     0   :  { %s501_s12 = smov 0   ;;  %s503_s13 = smov 0   ;;  %s578_s0 = inlined_call_operand.vmem [shape: bf16[8,1024], index: 0, kind: input, shape index: {}]   ;;  %s579_s1 = inlined_call_operand.vmem [shape: bf16[16,8], index: 1, kind: input, shape index: {}]   ;;  %s580_s2 = inlined_call_operand.vmem [shape: f32[16,1], index: 2, kind: input, shape index: {}]   ;;  %s581_s3 = inlined_call_operand.vmem [shape: f32[16,1024], index: 3, kind: output, shape index: {}]  }
   0x1   :  { %s505_s14 = smov 0  }
   0x2 LB: > { %s514_s15 = sadd.s32 4294967295, %s478_s14   ;;  %s516_s16 = sadd.s32 1, %s478_s14   ;;  %s478_s14 = sphi %s505_s14, %s585_s14   ;;  %s474_s13 = sphi %s503_s13, %s584_s13   ;;  %s470_s12 = sphi %s501_s12, %s583_s12  }
   0x3   : > { %s85_s17 = ssub.s32 %s478_s14, %s516_s16  ;;  %s88_s18 = sadd.s32 1, %s474_s13 }
   0x4   : > { %p86_p0 = scmp.eq.s32.totalorder %s85_s17, 0  ;;  %p98_p1 = scmp.ne.s32.totalorder %s474_s13, %s470_s12 }
   0x5   : > { %p99_p2 = scmp.eq.s32.totalorder %s514_s15, 1  ;;  %p406_p3 = scmp.ge.s32.totalorder %s478_s14, 1 }
   0x6   : > { %s524_s19 = scalar_select %p86_p0, %s474_s13, %s88_s18  }
   0x7   : > { %p526_p4 = por %p99_p2, %p98_p1  ;;  %p138_p5 = scmp.lt.s32.totalorder %s478_s14, 3 }
   0x9   : > { %p139_p6 = pnand %p406_p3, %p138_p5 }
   0xa   : > { %s408_s21 = sshll.u32 (!%p139_p6), %s514_s15, 2  ;;  %s158_s5 = sand.u32 (!%p139_p6), 1, %s470_s12  }
   0xb   : > { %142 = sbr.rel (%p139_p6) target bundleno = 237 (0xed), region = 32  ;;  %p162_p7 = scmp.lt.s32.totalorder (!%p139_p6), %s408_s21, 7 }
   0xc   : > { %s407_s6 = sshll.u32 (!%p139_p6), %s158_s5, 6 }
   0xd   : > { %s544_s7 = scalar_lea.vmem (!%p139_p6), [#allocation2], %s407_s6 }
  0x10   : > { %v480_v0 = vmov 0   ;;  %v173_v1 = vld [vmem:[%s580_s2] sm:$0xff]  ;;  %s587_s21 = smov (!%p162_p7, %s408_s21), 7  ;;  %v174_v2 = vld [vmem:[%s580_s2 + $0x8] sm:$0xff]  ;;  %vm204_vm0 = vcmask 1043456   ;;  %vm200_vm1 = vcmask 64512  }
  0x11   : > { %249 = vmatprep.mubr.bf16.mxu0 %v480_v0  ;;  %292 = vmatprep.mubr.bf16.mxu1 %v480_v0  ;;  %s409_s26 = sshll.u32 %s587_s21, 2  ;;  %v455_v11 = vld [vmem:[%s579_s1] sm:$0xff]   ;;  %s424_s8 = sshll.u32 (%p526_p4), %s514_s15, 5 }
  0x12   : > { %450 = vset.pattern.permute.xlu0 %v480_v0  ;;  %s165_s29 = scalar_lea.vmem %s578_s0, %s409_s26  ;;  %s320_s11 = scalar_lea.vmem (%p526_p4), %s581_s3, %s424_s8 }
  0x13   : > { %177 = vperm.xlu0 %450, %v173_v1   ;;  %v171_v3 = vld [vmem:[%s165_s29] sm:$0xff]  ;;  %v172_v4 = vld [vmem:[%s165_s29 + $0x8] sm:$0xff] }
  0x14   : > { %v412_v5 = vcombine.high %v171_v3, %v171_v3  ;;  %v414_v6 = vcombine.high %v172_v4, %v172_v4  ;;  %v411_v7 = vcombine.low %v171_v3, %v171_v3  ;;  %v413_v8 = vcombine.low %v172_v4, %v172_v4 }
  0x16   : > { %415 = vmatprep.subr.msk.bf16.mxu0 %vm204_vm0, %v412_v5  ;;  %417 = vmatprep.subr.msk.bf16.mxu1 %vm204_vm0, %v414_v6  ;;  %v206_v9 = vsel %vm204_vm0, %v411_v7, 0  ;;  %v212_v10 = vsel %vm204_vm0, %v413_v8, 0 }
  0x17   : > { %182 = vperm.xlu0 %450, %v174_v2   ;;  %232 = vmatpush1.bf16.msra.mxu0 %v206_v9 }
  0x18   : > { %275 = vmatpush1.bf16.msra.mxu1 %v212_v10 }
  0x1a   : > { %416 = vmatmul.mubr.msk.bf16.vlgmr.msra.gmra.mxu0 %vm200_vm1, %v455_v11 }
  0x1b   : > { %418 = vmatmul.mubr.msk.bf16.vlgmr.msra.gmra.mxu1 %vm200_vm1, %v455_v11 }
  0x8e   : > { %v178_v12 = vpop.permute.xlu0 %177 }
  0x92   : > { %v183_v19 = vpop.permute.xlu0 %182 }
  0xda   : > { %v251_v13 = vpop.f32.mrf.mxu0 }
  0xdb   : > { %v294_v14 = vpop.f32.mrf.mxu1  ;;  %v252_v15 = vadd.f32 %v251_v13, %v178_v12 }
  0xdc   : > { %v295_v16 = vadd.f32 %v294_v14, %v178_v12  ;;  %v253_v17 = vpop.f32.mrf.mxu0 }
  0xdd   : > { %v296_v18 = vpop.f32.mrf.mxu1  ;;  %303 = vst [vmem:[%s544_s7] sm:$0xff] %v252_v15  ;;  %v254_v20 = vadd.f32 %v253_v17, %v178_v12 }
  0xde   : > { %305 = vst [vmem:[%s544_s7 + $0x10] sm:$0xff] %v295_v16  ;;  %v297_v21 = vadd.f32 %v296_v18, %v178_v12  ;;  %v255_v22 = vpop.f32.mrf.mxu0 }
  0xdf   : > { %v298_v23 = vpop.f32.mrf.mxu1  ;;  %304 = vst [vmem:[%s544_s7 + $0x8] sm:$0xff] %v254_v20  ;;  %v256_v24 = vadd.f32 %v255_v22, %v183_v19 }
  0xe0   : > { %306 = vst [vmem:[%s544_s7 + $0x18] sm:$0xff] %v297_v21  ;;  %v299_v25 = vadd.f32 %v298_v23, %v183_v19  ;;  %v257_v26 = vpop.f32.mrf.mxu0  ;;  %317 = sbr.rel (!%p526_p4) target bundleno = 237 (0xed), region = 36 }
  0xe1   : > { %v300_v27 = vpop.f32.mrf.mxu1  ;;  %307 = vst [vmem:[%s544_s7 + $0x20] sm:$0xff] %v256_v24  ;;  %v258_v28 = vadd.f32 %v257_v26, %v183_v19 }
  0xe2   : > { %309 = vst [vmem:[%s544_s7 + $0x30] sm:$0xff] %v299_v25  ;;  %v301_v29 = vadd.f32 %v300_v27, %v183_v19 }
  0xe3   : > { %308 = vst [vmem:[%s544_s7 + $0x28] sm:$0xff] %v258_v28 }
  0xe4   : > { %310 = vst [vmem:[%s544_s7 + $0x38] sm:$0xff] %v301_v29  ;;  %v333_v30 = vld [vmem:[%s544_s7] sm:$0xff] (%p526_p4) }
  0xe5   : > { %v337_v32 = vld [vmem:[%s544_s7 + $0x10] sm:$0xff]  ;;  %334 = vst [vmem:[%s320_s11] sm:$0xff] %v333_v30 }
  0xe6   : > { %v335_v31 = vld [vmem:[%s544_s7 + $0x8] sm:$0xff]  ;;  %338 = vst [vmem:[%s320_s11 + $0x10] sm:$0xff] %v337_v32 }
  0xe7   : > { %v339_v33 = vld [vmem:[%s544_s7 + $0x18] sm:$0xff]  ;;  %336 = vst [vmem:[%s320_s11 + $0x8] sm:$0xff] %v335_v31 }
  0xe8   : > { %v341_v34 = vld [vmem:[%s544_s7 + $0x20] sm:$0xff]  ;;  %340 = vst [vmem:[%s320_s11 + $0x18] sm:$0xff] %v339_v33 }
  0xe9   : > { %342 = vst [vmem:[%s320_s11 + $0x40] sm:$0xff] %v341_v34  ;;  %v345_v36 = vld [vmem:[%s544_s7 + $0x30] sm:$0xff] }
  0xea   : > { %v343_v35 = vld [vmem:[%s544_s7 + $0x28] sm:$0xff]  ;;  %346 = vst [vmem:[%s320_s11 + $0x50] sm:$0xff] %v345_v36 }
  0xeb   : > { %344 = vst [vmem:[%s320_s11 + $0x48] sm:$0xff] %v343_v35  ;;  %v347_v37 = vld [vmem:[%s544_s7 + $0x38] sm:$0xff] }
  0xec   : > { %348 = vst [vmem:[%s320_s11 + $0x58] sm:$0xff] %v347_v37 }
  0xed PF: > { %p10_p8 = scmp.ge.s32.totalorder %s516_s16, 4   ;;  %s583_s12 = smov %s474_s13 }
  0xee   : > { %s584_s13 = smov %s524_s19  ;;  %s585_s14 = smov %s516_s16 }
  0xef   :  { %12 = sbr.rel (!%p10_p8) target bundleno = 2 (0x2), region = 85 }

</bundles_post_ra>
